<compile_context>
chip_gen: v7x
topology: tpu7x:2x2x1
jax: 0.10.0
libtpu: 0.0.40
codegen_flags: <defaults>
</compile_context>

<pallas_src>
import functools

import jax
import jax.numpy as jnp
from jax.experimental import pallas as pl
from jax.experimental.pallas import tpu as pltpu


def _cross_attention_kernel(x_ref, m_ref, wq_ref, wk_ref, wv_ref, wo_ref,
                            bo_ref, out_ref, *, heads, dim_head, softmax):
    bt, n, dim = x_ref.shape
    _, n_m, _ = m_ref.shape
    inner = heads * dim_head
    z = bt * heads

    # Flatten rows so the projections run with M = bt*n (better MXU fill).
    x2 = x_ref[...].reshape(bt * n, dim).astype(jnp.bfloat16)
    m2 = m_ref[...].reshape(bt * n_m, dim).astype(jnp.bfloat16)

    # q/k/v projections (Linear, no bias): bf16 MXU operands, f32 accumulation.
    # The softmax temperature (dim ** -0.5) is pre-folded into Wq.
    q = jnp.dot(x2, wq_ref[...], preferred_element_type=jnp.float32)
    k = jnp.dot(m2, wk_ref[...], preferred_element_type=jnp.float32)
    v = jnp.dot(m2, wv_ref[...], preferred_element_type=jnp.float32)

    # Split heads once (bf16 relayout) and collapse (batch, head) into a single
    # batch axis so scores / PV are single batched contractions over all heads.
    def split_heads(t, rows):
        t = t.astype(jnp.bfloat16).reshape(bt, rows, heads, dim_head)
        return t.transpose(0, 2, 1, 3).reshape(z, rows, dim_head)

    q3 = split_heads(q, n)        # (z, n,   d)
    k3 = split_heads(k, n_m)      # (z, n_m, d)
    v3 = split_heads(v, n_m)      # (z, n_m, d)

    # Scores: contract the last dims directly (no materialized k^T).
    dots = jnp.einsum('zqd,zkd->zqk', q3, k3,
                      preferred_element_type=jnp.float32)        # (z, n, n_m)

    if softmax:
        # Numerically-stable softmax in f32; normalization deferred past PV.
        mmax = jnp.max(dots, axis=-1, keepdims=True)
        p = jnp.exp(dots - mmax)
        denom = jnp.sum(p, axis=-1, keepdims=True)               # (z, n, 1)
        attn = p.astype(jnp.bfloat16)                            # un-normalized
    else:
        attn = dots.astype(jnp.bfloat16)

    pv = jnp.einsum('zqk,zkd->zqd', attn, v3,
                    preferred_element_type=jnp.float32)          # (z, n, d)
    if softmax:
        pv = pv * pl.reciprocal(denom, approx=True)              # EUP reciprocal

    # Merge heads back to (bt*n, inner) in bf16 — no VMEM scratch slab.
    merged = (pv.astype(jnp.bfloat16)
              .reshape(bt, heads, n, dim_head)
              .transpose(0, 2, 1, 3)
              .reshape(bt * n, inner))

    # Output projection + bias.  Dropout(p) in eval mode == identity.
    y = jnp.dot(merged, wo_ref[...], preferred_element_type=jnp.float32)
    y = y + bo_ref[...]                                          # (1, dim) bcast
    out_ref[...] = y.reshape(bt, n, dim).astype(out_ref.dtype)


def _pick_block_b(b, n, target_rows=512):
    """Largest divisor of b with block_b*n <= target_rows, capped at b//2 so the
    'parallel' grid axis has >= 2 steps (keeps both v7x TensorCores busy)."""
    cap = max(1, b // 2)
    best = 1
    for d in range(1, b + 1):
        if b % d == 0 and d <= cap and d * n <= max(target_rows, n):
            best = d
    return best


def prepare_cross_attention_params(params, dim):
    """One-time parameter transform (call once, NOT per forward pass):
    fold scale = dim**-0.5 into Wq in f32, cast MXU weights to bf16, reshape bias."""
    wq_t, wk_t, wv_t, wo_t, bo = params
    scale = dim ** (-0.5)
    return ((wq_t * scale).astype(jnp.bfloat16),   # scale folded before bf16 cast
            wk_t.astype(jnp.bfloat16),
            wv_t.astype(jnp.bfloat16),
            wo_t.astype(jnp.bfloat16),
            bo.reshape(1, -1).astype(jnp.float32))


def cross_attention(x, m, prepared_params, *, heads, dim_head,
                    softmax=True, block_b=None):
    b, n, dim = x.shape
    _, n_m, _ = m.shape
    inner_dim = heads * dim_head
    wq_t, wk_t, wv_t, wo_t, bo2 = prepared_params

    if block_b is None:
        block_b = _pick_block_b(b, n)
    assert b % block_b == 0, "block_b must divide batch"

    kernel = functools.partial(_cross_attention_kernel, heads=heads,
                               dim_head=dim_head, softmax=softmax)

    return pl.pallas_call(
        kernel,
        out_shape=jax.ShapeDtypeStruct((b, n, dim), x.dtype),
        grid_spec=pltpu.PrefetchScalarGridSpec(
            num_scalar_prefetch=0,
            grid=(b // block_b,),
            in_specs=[
                pl.BlockSpec((block_b, n, dim), lambda i: (i, 0, 0)),    # x
                pl.BlockSpec((block_b, n_m, dim), lambda i: (i, 0, 0)),  # m
                pl.BlockSpec((dim, inner_dim), lambda i: (0, 0)),        # Wq^T (scaled)
                pl.BlockSpec((dim, inner_dim), lambda i: (0, 0)),        # Wk^T
                pl.BlockSpec((dim, inner_dim), lambda i: (0, 0)),        # Wv^T
                pl.BlockSpec((inner_dim, dim), lambda i: (0, 0)),        # Wo^T
                pl.BlockSpec((1, dim), lambda i: (0, 0)),                # bias
            ],
            out_specs=pl.BlockSpec((block_b, n, dim), lambda i: (i, 0, 0)),
        ),
        compiler_params=pltpu.CompilerParams(
            dimension_semantics=("parallel",),
            vmem_limit_bytes=48 * 1024 * 1024),
    )(x, m, wq_t, wk_t, wv_t, wo_t, bo2)


def _reference(x, m, params, *, heads, dim_head):
    """Pure-JAX f32 reference mirroring the PyTorch forward (mask=None, eval)."""
    b, n, dim = x.shape
    wq_t, wk_t, wv_t, wo_t, bo = params
    scale = dim ** (-0.5)
    q = x @ wq_t
    k = m @ wk_t
    v = m @ wv_t

    def split(t):
        bb, nn, _ = t.shape
        return t.reshape(bb, nn, heads, dim_head).transpose(0, 2, 1, 3)

    q, k, v = split(q), split(k), split(v)
    dots = jnp.einsum('bhid,bhjd->bhij', q, k) * scale
    attn = jax.nn.softmax(dots, axis=-1)
    out = jnp.einsum('bhij,bhjd->bhid', attn, v)
    out = out.transpose(0, 2, 1, 3).reshape(b, -1, heads * dim_head)
    return out @ wo_t + bo


if __name__ == "__main__":
    # Small, module-consistent shapes.
    batch, seq_q, seq_kv = 2, 8, 8
    dim, heads, dim_head = 32, 8, 64
    inner_dim = heads * dim_head

    key = jax.random.PRNGKey(0)
    kx, km, k1, k2, k3, k4, k5 = jax.random.split(key, 7)

    x = jax.random.normal(kx, (batch, seq_q, dim), dtype=jnp.float32)
    m = jax.random.normal(km, (batch, seq_kv, dim), dtype=jnp.float32)

    # Deterministic parameter init (torch Linear stores (out, in); we keep the
    # transposed (in, out) form for the kernel).
    s_in = 1.0 / (dim ** 0.5)
    s_inner = 1.0 / (inner_dim ** 0.5)
    wq_t = jax.random.uniform(k1, (dim, inner_dim), jnp.float32, -s_in, s_in)
    wk_t = jax.random.uniform(k2, (dim, inner_dim), jnp.float32, -s_in, s_in)
    wv_t = jax.random.uniform(k3, (dim, inner_dim), jnp.float32, -s_in, s_in)
    wo_t = jax.random.uniform(k4, (inner_dim, dim), jnp.float32, -s_inner, s_inner)
    bo = jax.random.uniform(k5, (dim,), jnp.float32, -s_inner, s_inner)
    params = (wq_t, wk_t, wv_t, wo_t, bo)

    # One-time weight prep (bf16 cast + scale folding) — outside the hot path.
    prepared = prepare_cross_attention_params(params, dim)

    out = cross_attention(x, m, prepared, heads=heads, dim_head=dim_head)
    out = jax.block_until_ready(out)

    ref = _reference(x, m, params, heads=heads, dim_head=dim_head)
    assert out.shape == (batch, seq_q, dim)
    # bf16 MXU operands (f32 accumulation) -> tolerance relaxed vs f32 reference.
    assert jnp.allclose(out, ref, atol=5e-2, rtol=5e-2), "mismatch vs reference"

    print("KERNEL_OK")
</pallas_src>

<mosaic_0001>
module attributes {stable_mosaic.version = 11 : i64} {
  func.func @_cross_attention_kernel(%arg0: i32, %arg1: memref<1x8x32xf32, #tpu.memory_space<vmem>>, %arg2: memref<1x8x32xf32, #tpu.memory_space<vmem>>, %arg3: memref<32x512xbf16, #tpu.memory_space<vmem>>, %arg4: memref<32x512xbf16, #tpu.memory_space<vmem>>, %arg5: memref<32x512xbf16, #tpu.memory_space<vmem>>, %arg6: memref<512x32xbf16, #tpu.memory_space<vmem>>, %arg7: memref<1x32xf32, #tpu.memory_space<vmem>>, %arg8: memref<1x8x32xf32, #tpu.memory_space<vmem>>) attributes {dimension_semantics = [#tpu.dimension_semantics<parallel>], iteration_bounds = array<i64: 2>, scalar_prefetch = 0 : i64, scratch_operands = 0 : i64, tpu.core_type = #tpu.core_type<tc>, window_params = [{transform_indices = @transform_0, window_bounds = array<i64: 1, 8, 32>}, {transform_indices = @transform_1, window_bounds = array<i64: 1, 8, 32>}, {pipeline_mode = #tpu.pipeline_mode<synchronous>, transform_indices = @transform_2, window_bounds = array<i64: 32, 512>}, {pipeline_mode = #tpu.pipeline_mode<synchronous>, transform_indices = @transform_3, window_bounds = array<i64: 32, 512>}, {pipeline_mode = #tpu.pipeline_mode<synchronous>, transform_indices = @transform_4, window_bounds = array<i64: 32, 512>}, {pipeline_mode = #tpu.pipeline_mode<synchronous>, transform_indices = @transform_5, window_bounds = array<i64: 512, 32>}, {pipeline_mode = #tpu.pipeline_mode<synchronous>, transform_indices = @transform_6, window_bounds = array<i64: 1, 32>}, {transform_indices = @transform_7, window_bounds = array<i64: 1, 8, 32>}]} {
    %c0 = arith.constant 0 : index
    %c0_0 = arith.constant 0 : index
    %c0_1 = arith.constant 0 : index
    %0 = vector.load %arg1[%c0, %c0_0, %c0_1] : memref<1x8x32xf32, #tpu.memory_space<vmem>>, vector<1x8x32xf32>
    %1 = vector.shape_cast %0 : vector<1x8x32xf32> to vector<8x32xf32>
    %2 = arith.truncf %1 : vector<8x32xf32> to vector<8x32xbf16>
    %c0_2 = arith.constant 0 : index
    %c0_3 = arith.constant 0 : index
    %c0_4 = arith.constant 0 : index
    %3 = vector.load %arg2[%c0_2, %c0_3, %c0_4] : memref<1x8x32xf32, #tpu.memory_space<vmem>>, vector<1x8x32xf32>
    %4 = vector.shape_cast %3 : vector<1x8x32xf32> to vector<8x32xf32>
    %5 = arith.truncf %4 : vector<8x32xf32> to vector<8x32xbf16>
    %c0_5 = arith.constant 0 : index
    %c0_6 = arith.constant 0 : index
    %6 = vector.load %arg3[%c0_5, %c0_6] : memref<32x512xbf16, #tpu.memory_space<vmem>>, vector<32x512xbf16>
    %cst = arith.constant dense<0.000000e+00> : vector<8x512xf32>
    %7 = tpu.matmul %2, %6, %cst {dimension_numbers = #tpu.dot_dimension_numbers<[1], [0], [0], [1], [0, 0, 1, 1], [], []>} : vector<8x32xbf16>, vector<32x512xbf16>, vector<8x512xf32> -> vector<8x512xf32>
    %c0_7 = arith.constant 0 : index
    %c0_8 = arith.constant 0 : index
    %8 = vector.load %arg4[%c0_7, %c0_8] : memref<32x512xbf16, #tpu.memory_space<vmem>>, vector<32x512xbf16>
    %cst_9 = arith.constant dense<0.000000e+00> : vector<8x512xf32>
    %9 = tpu.matmul %5, %8, %cst_9 {dimension_numbers = #tpu.dot_dimension_numbers<[1], [0], [0], [1], [0, 0, 1, 1], [], []>} : vector<8x32xbf16>, vector<32x512xbf16>, vector<8x512xf32> -> vector<8x512xf32>
    %c0_10 = arith.constant 0 : index
    %c0_11 = arith.constant 0 : index
    %10 = vector.load %arg5[%c0_10, %c0_11] : memref<32x512xbf16, #tpu.memory_space<vmem>>, vector<32x512xbf16>
    %cst_12 = arith.constant dense<0.000000e+00> : vector<8x512xf32>
    %11 = tpu.matmul %5, %10, %cst_12 {dimension_numbers = #tpu.dot_dimension_numbers<[1], [0], [0], [1], [0, 0, 1, 1], [], []>} : vector<8x32xbf16>, vector<32x512xbf16>, vector<8x512xf32> -> vector<8x512xf32>
    %12 = arith.truncf %7 : vector<8x512xf32> to vector<8x512xbf16>
    %13 = vector.shape_cast %12 : vector<8x512xbf16> to vector<1x8x8x64xbf16>
    %14 = tpu.transpose %13, [0, 2, 1, 3] : vector<1x8x8x64xbf16> -> vector<1x8x8x64xbf16>
    %15 = vector.shape_cast %14 : vector<1x8x8x64xbf16> to vector<8x8x64xbf16>
    %16 = arith.truncf %9 : vector<8x512xf32> to vector<8x512xbf16>
    %17 = vector.shape_cast %16 : vector<8x512xbf16> to vector<1x8x8x64xbf16>
    %18 = tpu.transpose %17, [0, 2, 1, 3] : vector<1x8x8x64xbf16> -> vector<1x8x8x64xbf16>
    %19 = vector.shape_cast %18 : vector<1x8x8x64xbf16> to vector<8x8x64xbf16>
    %20 = arith.truncf %11 : vector<8x512xf32> to vector<8x512xbf16>
    %21 = vector.shape_cast %20 : vector<8x512xbf16> to vector<1x8x8x64xbf16>
    %22 = tpu.transpose %21, [0, 2, 1, 3] : vector<1x8x8x64xbf16> -> vector<1x8x8x64xbf16>
    %23 = vector.shape_cast %22 : vector<1x8x8x64xbf16> to vector<8x8x64xbf16>
    "tpu.trace_start"() <{level = 10 : i32, message = "zqd,zkd->zqk"}> : () -> ()
    %cst_13 = arith.constant dense<0.000000e+00> : vector<8x8x8xf32>
    %24 = tpu.matmul %15, %19, %cst_13 {dimension_numbers = #tpu.dot_dimension_numbers<[2], [2], [1], [1], [0, 0, 0, 1, 1, 1], [0], [0]>} : vector<8x8x64xbf16>, vector<8x8x64xbf16>, vector<8x8x8xf32> -> vector<8x8x8xf32>
    "tpu.trace_stop"() : () -> ()
    %cst_14 = arith.constant dense<0xFF800000> : vector<8x8xf32>
    %25 = vector.multi_reduction <maximumf>, %24, %cst_14 [2] : vector<8x8x8xf32> to vector<8x8xf32>
    %26 = vector.shape_cast %25 : vector<8x8xf32> to vector<8x8x1xf32>
    %27 = vector.broadcast %26 : vector<8x8x1xf32> to vector<8x8x8xf32>
    %28 = arith.subf %24, %27 : vector<8x8x8xf32>
    %29 = math.exp %28 : vector<8x8x8xf32>
    %cst_15 = arith.constant dense<0.000000e+00> : vector<8x8xf32>
    %30 = vector.multi_reduction <add>, %29, %cst_15 [2] : vector<8x8x8xf32> to vector<8x8xf32>
    %31 = vector.shape_cast %30 : vector<8x8xf32> to vector<8x8x1xf32>
    %32 = arith.truncf %29 : vector<8x8x8xf32> to vector<8x8x8xbf16>
    "tpu.trace_start"() <{level = 10 : i32, message = "zqk,zkd->zqd"}> : () -> ()
    %cst_16 = arith.constant dense<0.000000e+00> : vector<8x8x64xf32>
    %33 = tpu.matmul %32, %23, %cst_16 {dimension_numbers = #tpu.dot_dimension_numbers<[2], [1], [1], [2], [0, 0, 0, 1, 1, 2], [0], [0]>} : vector<8x8x8xbf16>, vector<8x8x64xbf16>, vector<8x8x64xf32> -> vector<8x8x64xf32>
    "tpu.trace_stop"() : () -> ()
    %34 = tpu.reciprocal %31 {approx = true} : vector<8x8x1xf32> -> vector<8x8x1xf32>
    %35 = vector.broadcast %34 : vector<8x8x1xf32> to vector<8x8x64xf32>
    %36 = arith.mulf %33, %35 : vector<8x8x64xf32>
    %37 = arith.truncf %36 : vector<8x8x64xf32> to vector<8x8x64xbf16>
    %38 = vector.shape_cast %37 : vector<8x8x64xbf16> to vector<1x8x8x64xbf16>
    %39 = tpu.transpose %38, [0, 2, 1, 3] : vector<1x8x8x64xbf16> -> vector<1x8x8x64xbf16>
    %40 = vector.shape_cast %39 : vector<1x8x8x64xbf16> to vector<8x512xbf16>
    %c0_17 = arith.constant 0 : index
    %c0_18 = arith.constant 0 : index
    %41 = vector.load %arg6[%c0_17, %c0_18] : memref<512x32xbf16, #tpu.memory_space<vmem>>, vector<512x32xbf16>
    %cst_19 = arith.constant dense<0.000000e+00> : vector<8x32xf32>
    %42 = tpu.matmul %40, %41, %cst_19 {dimension_numbers = #tpu.dot_dimension_numbers<[1], [0], [0], [1], [0, 0, 1, 1], [], []>} : vector<8x512xbf16>, vector<512x32xbf16>, vector<8x32xf32> -> vector<8x32xf32>
    %c0_20 = arith.constant 0 : index
    %c0_21 = arith.constant 0 : index
    %43 = vector.load %arg7[%c0_20, %c0_21] : memref<1x32xf32, #tpu.memory_space<vmem>>, vector<1x32xf32>
    %44 = vector.broadcast %43 : vector<1x32xf32> to vector<8x32xf32>
    %45 = arith.addf %42, %44 : vector<8x32xf32>
    %46 = vector.shape_cast %45 : vector<8x32xf32> to vector<1x8x32xf32>
    %c0_22 = arith.constant 0 : index
    %c0_23 = arith.constant 0 : index
    %c0_24 = arith.constant 0 : index
    %47 = vector.load %arg8[%c0_22, %c0_23, %c0_24] : memref<1x8x32xf32, #tpu.memory_space<vmem>>, vector<1x8x32xf32>
    tpu.vector_store %arg8[%c0_22, %c0_23, %c0_24], %46 {strides = array<i32>} : memref<1x8x32xf32, #tpu.memory_space<vmem>>, vector<1x8x32xf32>,
    return
  }
  func.func @transform_0(%arg0: i32) -> (i32, i32, i32) {
    %c0_i32 = arith.constant 0 : i32
    %c0_i32_0 = arith.constant 0 : i32
    %c0_i32_1 = arith.constant 0 : i32
    return %arg0, %c0_i32, %c0_i32_0 : i32, i32, i32
  }
  func.func @transform_1(%arg0: i32) -> (i32, i32, i32) {
    %c0_i32 = arith.constant 0 : i32
    %c0_i32_0 = arith.constant 0 : i32
    %c0_i32_1 = arith.constant 0 : i32
    return %arg0, %c0_i32, %c0_i32_0 : i32, i32, i32
  }
  func.func @transform_2(%arg0: i32) -> (i32, i32) {
    %c0_i32 = arith.constant 0 : i32
    %c0_i32_0 = arith.constant 0 : i32
    %c0_i32_1 = arith.constant 0 : i32
    return %c0_i32, %c0_i32_0 : i32, i32
  }
  func.func @transform_3(%arg0: i32) -> (i32, i32) {
    %c0_i32 = arith.constant 0 : i32
    %c0_i32_0 = arith.constant 0 : i32
    %c0_i32_1 = arith.constant 0 : i32
    return %c0_i32, %c0_i32_0 : i32, i32
  }
  func.func @transform_4(%arg0: i32) -> (i32, i32) {
    %c0_i32 = arith.constant 0 : i32
    %c0_i32_0 = arith.constant 0 : i32
    %c0_i32_1 = arith.constant 0 : i32
    return %c0_i32, %c0_i32_0 : i32, i32
  }
  func.func @transform_5(%arg0: i32) -> (i32, i32) {
    %c0_i32 = arith.constant 0 : i32
    %c0_i32_0 = arith.constant 0 : i32
    %c0_i32_1 = arith.constant 0 : i32
    return %c0_i32, %c0_i32_0 : i32, i32
  }
  func.func @transform_6(%arg0: i32) -> (i32, i32) {
    %c0_i32 = arith.constant 0 : i32
    %c0_i32_0 = arith.constant 0 : i32
    %c0_i32_1 = arith.constant 0 : i32
    return %c0_i32, %c0_i32_0 : i32, i32
  }
  func.func @transform_7(%arg0: i32) -> (i32, i32, i32) {
    %c0_i32 = arith.constant 0 : i32
    %c0_i32_0 = arith.constant 0 : i32
    %c0_i32_1 = arith.constant 0 : i32
    return %arg0, %c0_i32, %c0_i32_0 : i32, i32, i32
  }
}

</mosaic_0001>

<bundles_post_ra>
// kernel: tpu_custom_call.1
= control target key start
LH: loop header
LB: loop body
LE: loop exit
PB: predicated region body
PF: predicated region fallthrough
CT: control target
= control target key end

     0   :  { %12 = vsyncpa [#allocation3], 0  ;;  %s3957_s0 = inlined_call_operand.vmem [shape: f32[2,8,32], index: 0, kind: input, shape index: {}]   ;;  %s3958_s1 = inlined_call_operand.vmem [shape: f32[2,8,32], index: 1, kind: input, shape index: {}]   ;;  %s3959_s2 = inlined_call_operand.vmem [shape: bf16[32,512], index: 2, kind: input, shape index: {}]   ;;  %s3960_s3 = inlined_call_operand.vmem [shape: bf16[32,512], index: 3, kind: input, shape index: {}]   ;;  %s3961_s4 = inlined_call_operand.vmem [shape: bf16[32,512], index: 4, kind: input, shape index: {}]   ;;  %s3962_s5 = inlined_call_operand.vmem [shape: bf16[512,32], index: 5, kind: input, shape index: {}]   ;;  %s3963_s6 = inlined_call_operand.vmem [shape: f32[1,32], index: 6, kind: input, shape index: {}]   ;;  %s3964_s7 = inlined_call_operand.hbm [shape: f32[2,8,32], index: 7, kind: output, shape index: {}]  }
   0x1   :  { %14 = vsyncpa [#allocation3 + $0x1], 0  ;;  %s3345_s24 = smov 0   ;;  %s3347_s25 = smov 0  }
   0x2   :  { %s3349_s26 = smov 0   ;;  %s3351_s27 = smov 0  }
   0x3 LB: > { %s3366_s28 = sadd.s32 4294967295, %s3296_s27   ;;  %s2817_s29 = sadd.s32 4294967294, %s3296_s27   ;;  %s3296_s27 = sphi %s3351_s27, %s3970_s27   ;;  %s3292_s26 = sphi %s3349_s26, %s3969_s26   ;;  %s3288_s25 = sphi %s3347_s25, %s3968_s25   ;;  %s3284_s24 = sphi %s3345_s24, %s3967_s24  }
   0x4   : > { %s3370_s30 = sadd.s32 1, %s3296_s27   ;;  %s184_s8 = sadd.s32 1, %s3292_s26 }
   0x5   : > { %s181_s9 = ssub.s32 %s3296_s27, %s3370_s30  ;;  %p194_p0 = scmp.ne.s32.totalorder %s3292_s26, %s3288_s25 }
   0x6   : > { %p182_p1 = scmp.eq.s32.totalorder %s181_s9, 0  ;;  %p195_p2 = scmp.eq.s32.totalorder %s3366_s28, 1 }
   0x7   : > { %p200_p3 = scmp.ne.s32.totalorder %s3288_s25, %s3284_s24  ;;  %p201_p4 = scmp.eq.s32.totalorder %s2817_s29, 1 }
   0x8   : > { %s3381_s10 = scalar_select %p182_p1, %s3292_s26, %s184_s8  }
   0x9   : > { %p3383_p5 = por %p195_p2, %p194_p0  ;;  %p3387_p6 = por %p201_p4, %p200_p3 }
   0xa   : > { %p2820_p7 = scmp.ge.s32.totalorder %s3296_s27, 1  ;;  %p248_p8 = scmp.lt.s32.totalorder %s3296_s27, 3 }
   0xc   : > { %p249_p9 = pnand %p2820_p7, %p248_p8 }
   0xd   : > { %v3134_v0 = vld [vmem:[%s3959_s2 + $0x4] ss:$16 sps:$4 sm:$0xff] (!%p249_p9)   ;;  %p283_p10 = scmp.lt.s32.totalorder (!%p249_p9), %s3366_s28, 1  ;;  %v3136_v1 = vld [vmem:[%s3959_s2 + $0xc] ss:$16 sps:$4 sm:$0xff] (!%p249_p9)   ;;  %v3298_v2 = vmov (!%p249_p9), 0   ;;  %v717_v31 = vlaneseq (!%p249_p9) }
   0xe   : > { %252 = sbr.rel (%p249_p9) target bundleno = 1445 (0x5a5), region = 48  ;;  %380 = vmatprep.mubr.bf16.mxu0 (!%p249_p9), %v3298_v2  ;;  %421 = vmatprep.mubr.bf16.mxu1 (!%p249_p9), %v3298_v2  ;;  %v3138_v3 = vld [vmem:[%s3959_s2] ss:$16 sps:$4 sm:$0xff] (!%p249_p9)   ;;  %v3139_v4 = vld [vmem:[%s3959_s2 + $0x8] ss:$16 sps:$4 sm:$0xff] (!%p249_p9)   ;;  %vm344_vm0 = vcmask (!%p249_p9), 261120  }
   0xf   : > { %348 = vmatprep.subr.bf16.mxu0 (!%p249_p9), %v3134_v0  ;;  %389 = vmatprep.subr.bf16.mxu1 (!%p249_p9), %v3136_v1  ;;  %v3140_v5 = vld [vmem:[%s3959_s2 + $0x24] ss:$16 sps:$4 sm:$0xff] (!%p249_p9)   ;;  %v3142_v6 = vld [vmem:[%s3959_s2 + $0x2c] ss:$16 sps:$4 sm:$0xff] (!%p249_p9)   ;;  %v3144_v7 = vld [vmem:[%s3959_s2 + $0x20] ss:$16 sps:$4 sm:$0xff] (!%p249_p9)  }
  0x10   : > { %349 = vmatpush1.bf16.msra.mxu0 (!%p249_p9), %v3138_v3  ;;  %390 = vmatpush1.bf16.msra.mxu1 (!%p249_p9), %v3139_v4  ;;  %v3145_v8 = vld [vmem:[%s3959_s2 + $0x28] ss:$16 sps:$4 sm:$0xff] (!%p249_p9)   ;;  %v3146_v10 = vld [vmem:[%s3960_s3] ss:$16 sps:$4 sm:$0xff] (!%p249_p9)   ;;  %v3148_v12 = vld [vmem:[%s3960_s3 + $0x4] ss:$16 sps:$4 sm:$0xff] (!%p249_p9)  }
  0x11   : > { %350 = vmatprep.subr.bf16.mxu0 (!%p249_p9), %v3140_v5  ;;  %391 = vmatprep.subr.bf16.mxu1 (!%p249_p9), %v3142_v6  ;;  %v3149_v13 = vld [vmem:[%s3960_s3 + $0x8] ss:$16 sps:$4 sm:$0xff] (!%p249_p9)   ;;  %v3151_v14 = vld [vmem:[%s3960_s3 + $0xc] ss:$16 sps:$4 sm:$0xff] (!%p249_p9)   ;;  %v3154_v15 = vld [vmem:[%s3960_s3 + $0x24] ss:$16 sps:$4 sm:$0xff] (!%p249_p9)  }
  0x12   : > { %v3152_v17 = vld [vmem:[%s3960_s3 + $0x20] ss:$16 sps:$4 sm:$0xff] (!%p249_p9)   ;;  %v3155_v18 = vld [vmem:[%s3960_s3 + $0x28] ss:$16 sps:$4 sm:$0xff] (!%p249_p9)   ;;  %v3157_v19 = vld [vmem:[%s3960_s3 + $0x2c] ss:$16 sps:$4 sm:$0xff] (!%p249_p9)  }
  0x13   : > { %v3158_v21 = vld [vmem:[%s3961_s4] ss:$16 sps:$4 sm:$0xff] (!%p249_p9)   ;;  %v3160_v22 = vld [vmem:[%s3961_s4 + $0x4] ss:$16 sps:$4 sm:$0xff] (!%p249_p9)   ;;  %v3161_v23 = vld [vmem:[%s3961_s4 + $0x8] ss:$16 sps:$4 sm:$0xff] (!%p249_p9)  }
  0x14   : > { %351 = vmatpush1.bf16.msra.mxu0 (!%p249_p9), %v3144_v7  ;;  %392 = vmatpush1.bf16.msra.mxu1 (!%p249_p9), %v3145_v8  ;;  %v3163_v24 = vld [vmem:[%s3961_s4 + $0xc] ss:$16 sps:$4 sm:$0xff] (!%p249_p9)   ;;  %v3166_v25 = vld [vmem:[%s3961_s4 + $0x24] ss:$16 sps:$4 sm:$0xff] (!%p249_p9)   ;;  %v3164_v27 = vld [vmem:[%s3961_s4 + $0x20] ss:$16 sps:$4 sm:$0xff] (!%p249_p9)  }
  0x15   : > { %s284_s21 = scalar_select %p283_p10, %s3366_s28, 1  ;;  %481 = vmatprep.subr.bf16.mxu0 %v3148_v12  ;;  %522 = vmatprep.subr.bf16.mxu1 %v3151_v14  ;;  %v3169_v26 = vld [vmem:[%s3961_s4 + $0x2c] ss:$16 sps:$4 sm:$0xff]   ;;  %v3167_v28 = vld [vmem:[%s3961_s4 + $0x28] ss:$16 sps:$4 sm:$0xff]   ;;  %v3485_v33 = vshrl.u32 %v717_v31, 7 }
  0x16   : > { %v3299_v29 = vmov 1983009808   ;;  %s3300_s13 = smov 64   ;;  %v3301_v8 = vmov 0.0   ;;  %vm3302_vm1 = vmmov 0   ;;  %vm1329_vm2 = vcmask 523264  }
  0x17   : > { %s2822_s14 = sshll.u32 %s284_s21, 3  ;;  %v715_v30 = vunpack.c.l.s4 %v3299_v29  ;;  %vm1698_vm3 = vcmask 64512   ;;  %vm1782_vm4 = vcmask 1043456   ;;  %s280_s9 = sand.u32 1, %s3288_s25  }
  0x18   : > { %s286_s19 = scalar_lea.vmem %s3957_s0, %s2822_s14  ;;  %s290_s8 = scalar_lea.vmem %s3958_s1, %s2822_s14 }
  0x19   : > { %v292_v9 = vld [vmem:[%s286_s19] sm:$0xff]  ;;  %v716_v32 = vunpack.c.0.s8 %v715_v30  ;;  %s2914_s17 = sshll.u32 %s3366_s28, 7  ;;  %s2733_s28 = scalar_lea.sflag [#allocation3], %s280_s9 }
  0x1a   : > { %v293_v11 = vpack.c.bf16 %v292_v9, %v292_v9  ;;  %v294_v16 = vld [vmem:[%s290_s8] sm:$0xff]  ;;  %s3914_s22 = scalar_lea.hbm %s3964_s7, %s2914_s17  ;;  %s3304_s29 = smov [#allocation2]  }
  0x1b   : > { %v295_v20 = vpack.c.bf16 %v294_v16, %v294_v16  ;;  %v3488_v34 = vsub.s32 %v716_v32, %v3485_v33  ;;  %s3238_s21 = sshll.u32 %s3304_s29, 4  ;;  %s3239_s21 = int_to_ptr.vmem [resolvable:$false] %s3238_s21 }
  0x1c   : > { %2832 = vmatmul.mubr.msk.bf16.vlgmr.msra.gmra.mrb[0].mxu0 %vm344_vm0, %v293_v11  ;;  %2833 = vmatmul.mubr.msk.bf16.vlgmr.msra.gmra.mrb[0].mxu1 %vm344_vm0, %v293_v11  ;;  %s3240_s8 = scalar_lea.vmem %s3239_s21, 256 }
  0x1d   : > { %482 = vmatpush1.bf16.msra.mxu0 %v3146_v10  ;;  %523 = vmatpush1.bf16.msra.mxu1 %v3149_v13 }
  0x1e   : > { %483 = vmatprep.subr.bf16.mxu0 %v3154_v15  ;;  %524 = vmatprep.subr.bf16.mxu1 %v3157_v19 }
  0x1f   : > { %513 = vmatprep.mubr.bf16.mxu0 %v3298_v2  ;;  %554 = vmatprep.mubr.bf16.mxu1 %v3298_v2 }
  0x21   : > { %484 = vmatpush1.bf16.msra.mxu0 %v3152_v17  ;;  %525 = vmatpush1.bf16.msra.mxu1 %v3155_v18  ;;  %v3303_v17 = vmov 1934713408  }
  0x22   : > { %611 = vmatprep.subr.bf16.mxu0 %v3160_v22  ;;  %652 = vmatprep.subr.bf16.mxu1 %v3163_v24  ;;  %v732_v18 = vunpack.c.l.s4 %v3303_v17 }
  0x24   : > { %2842 = vmatmul.mubr.msk.bf16.vlgmr.msra.gmra.mrb[4].mxu0 %vm344_vm0, %v295_v20  ;;  %2843 = vmatmul.mubr.msk.bf16.vlgmr.msra.gmra.mrb[4].mxu1 %vm344_vm0, %v295_v20 }
  0x25   : > { %643 = vmatprep.mubr.bf16.mxu0 %v3298_v2  ;;  %684 = vmatprep.mubr.bf16.mxu1 %v3298_v2 }
  0x26   : > { %612 = vmatpush1.bf16.msra.mxu0 %v3158_v21  ;;  %653 = vmatpush1.bf16.msra.mxu1 %v3161_v23 }
  0x27   : > { %613 = vmatprep.subr.bf16.mxu0 %v3166_v25  ;;  %654 = vmatprep.subr.bf16.mxu1 %v3169_v26  ;;  %v733_v25 = vunpack.c.0.s8 %v732_v18 }
  0x29   : > { %v3535_v30 = vsub.s32 %v733_v25, %v3485_v33 }
  0x2a   : > { %614 = vmatpush1.bf16.msra.mxu0 %v3164_v27  ;;  %655 = vmatpush1.bf16.msra.mxu1 %v3167_v28 }
  0x2b   : > { %2993 = vmatprep.subr.bf16.mxu0 %v3301_v8  ;;  %2999 = vmatprep.subr.bf16.mxu1 %v3301_v8 }
  0x2d   : > { %2852 = vmatmul.mubr.msk.bf16.vlgmr.msra.gmra.mrb[8].mxu0 %vm344_vm0, %v295_v20  ;;  %2853 = vmatmul.mubr.msk.bf16.vlgmr.msra.gmra.mrb[8].mxu1 %vm344_vm0, %v295_v20 }
  0x2e   : > { %2995 = vmatprep.mubr.msk.bf16.mxu0 %vm3302_vm1, %v3301_v8  ;;  %3001 = vmatprep.mubr.msk.bf16.mxu1 %vm3302_vm1, %v3301_v8 }
  0xef   : > { %v382_v35 = vpop.f32.mrb[0].mxu0  ;;  %v423_v36 = vpop.f32.mrb[0].mxu1 }
  0xf0   : > { %v2854_v37 = vpack.c.bf16 %v423_v36, %v382_v35  ;;  %v384_v38 = vpop.f32.mrb[1].mxu0  ;;  %v425_v39 = vpop.f32.mrb[1].mxu1  ;;  %v693_v5 = vpack.c.bf16 %v382_v35, %v382_v35  ;;  %v695_v7 = vpack.c.bf16 %v423_v36, %v423_v36 }
  0xf1   : > { %v2855_v40 = vpack.c.bf16 %v425_v39, %v384_v38  ;;  %v386_v41 = vpop.f32.mrb[2].mxu0  ;;  %v427_v42 = vpop.f32.mrb[2].mxu1  ;;  %v694_v4 = vpack.c.bf16 %v384_v38, %v384_v38  ;;  %v696_v6 = vpack.c.bf16 %v425_v39, %v425_v39 }
  0xf2   : > { %v3491_v43 = vrot.slane %v2854_v37, %v3488_v34  ;;  %v387_v44 = vpop.f32.mrb[3].mxu0  ;;  %v428_v45 = vpop.f32.mrb[3].mxu1 }
  0xf3   : > { %v3494_v46 = vrot.slane %v2855_v40, %v3488_v34 }
  0xf5   : > { %v729_v47 = vcombine.low %v3491_v43, %v3494_v46  ;;  %v730_v48 = vcombine.high %v3491_v43, %v3494_v46 }
  0xf7   : > { %v515_v49 = vpop.f32.mrb[4].mxu0  ;;  %v556_v50 = vpop.f32.mrb[4].mxu1  ;;  %v3543_v39 = vrot.slane %v729_v47, %v3535_v30 }
  0xf8   : > { %v2856_v51 = vpack.c.bf16 %v556_v50, %v515_v49  ;;  %v517_v52 = vpop.f32.mrb[5].mxu0  ;;  %v558_v53 = vpop.f32.mrb[5].mxu1  ;;  %v907_v54 = vpack.c.bf16 %v556_v50, %v556_v50  ;;  %v905_v55 = vpack.c.bf16 %v515_v49, %v515_v49 }
  0xf9   : > { %v519_v56 = vpop.f32.mrb[6].mxu0  ;;  %v560_v57 = vpop.f32.mrb[6].mxu1  ;;  %v2857_v59 = vpack.c.bf16 %v558_v53, %v517_v52  ;;  %v908_v62 = vpack.c.bf16 %v558_v53, %v558_v53  ;;  %v906_v0 = vpack.c.bf16 %v517_v52, %v517_v52  ;;  %v3555_v47 = vcombine.high %v3543_v39, %v3298_v2 }
  0xfa   : > { %v932_v58 = vrot.slane %v2856_v51, %v3488_v34  ;;  %918 = vrot.lane.b32.xlu1 %v907_v54, %s3300_s13  ;;  %v561_v60 = vpop.f32.mrb[7].mxu1  ;;  %v520_v61 = vpop.f32.mrb[7].mxu0  ;;  %910 = vrot.lane.b32.xlu0 %v905_v55, %s3300_s13  ;;  %v744_v51 = vrot.slane %v730_v48, %v3535_v30 }
  0xfb   : > { %v940_v63 = vrot.slane %v2857_v59, %v3488_v34 }
  0xfd   : > { %v941_v1 = vcombine.low %v932_v58, %v940_v63  ;;  %v942_v3 = vcombine.high %v932_v58, %v940_v63 }
  0xfe   : > { %922 = vrot.lane.b32.xlu1 %v908_v62, %s3300_s13  ;;  %914 = vrot.lane.b32.xlu0 %v906_v0, %s3300_s13 }
  0xff   : > { %v949_v35 = vrot.slane %v941_v1, %v3535_v30  ;;  %v956_v36 = vrot.slane %v942_v3, %v3535_v30 }
 0x100   : > { %v645_v9 = vpop.f32.mrb[8].mxu0  ;;  %v3516_v12 = vpop.f32.mrb[8].mxu1 }
 0x101   : > { %v1117_v10 = vpack.c.bf16 %v645_v9, %v645_v9  ;;  %v647_v11 = vpop.f32.mrb[9].mxu0  ;;  %v2858_v15 = vpack.c.bf16 %v3516_v12, %v645_v9  ;;  %v3519_v16 = vpop.f32.mrb[9].mxu1  ;;  %v957_v42 = vcombine.high %v949_v35, %v3298_v2  ;;  %v958_v44 = vcombine.high %v956_v36, %v3298_v2 }
 0x102   : > { %702 = vrot.lane.b32.xlu1 %v694_v4, %s3300_s13  ;;  %698 = vrot.lane.b32.xlu0 %v693_v5, %s3300_s13  ;;  %v1118_v13 = vpack.c.bf16 %v647_v11, %v647_v11  ;;  %v649_v14 = vpop.f32.mrb[10].mxu0  ;;  %v2859_v20 = vpack.c.bf16 %v3519_v16, %v647_v11  ;;  %v690_v21 = vpop.f32.mrb[10].mxu1  ;;  %v997_v52 = vshrl.u32 %v949_v35, 16  ;;  %v1013_v57 = vshrl.u32 %v956_v36, 16 }
 0x103   : > { %v650_v19 = vpop.f32.mrb[11].mxu0  ;;  %v3524_v22 = vrot.slane %v2858_v15, %v3488_v34  ;;  %v691_v23 = vpop.f32.mrb[11].mxu1  ;;  %v1005_v56 = vshrl.u32 %v957_v42, 16  ;;  %v1021_v58 = vshrl.u32 %v958_v44, 16  ;;  %v785_v21 = vshrl.u32 %v3543_v39, 16 }
 0x104   : > { %v3528_v24 = vrot.slane %v2859_v20, %v3488_v34  ;;  %v801_v23 = vshrl.u32 %v744_v51, 16 }
 0x106   : > { %710 = vrot.lane.b32.xlu1 %v696_v6, %s3300_s13  ;;  %706 = vrot.lane.b32.xlu0 %v695_v7, %s3300_s13  ;;  %v1153_v26 = vcombine.low %v3524_v22, %v3528_v24  ;;  %v1154_v27 = vcombine.high %v3524_v22, %v3528_v24 }
 0x10a   : > { %1122 = vrot.lane.b32.xlu0 %v1117_v10, %s3300_s13  ;;  %1126 = vrot.lane.b32.xlu1 %v1118_v13, %s3300_s13  ;;  %v746_v13 = vcombine.high %v744_v51, %v3298_v2 }
 0x16c   : > { %v919_v28 = vpop.permute.xlu1 %918  ;;  %v911_v29 = vpop.permute.xlu0 %910 }
 0x16d   : > { %v959_v31 = vcombine.low %v911_v29, %v919_v28  ;;  %v793_v29 = vshrl.u32 %v3555_v47, 16 }
 0x16f   : > { %v966_v40 = vrot.slane %v959_v31, %v3488_v34 }
 0x170   : > { %v923_v32 = vpop.permute.xlu1 %922  ;;  %v915_v37 = vpop.permute.xlu0 %914 }
 0x171   : > { %v967_v38 = vcombine.low %v915_v37, %v923_v32 }
 0x173   : > { %v974_v41 = vrot.slane %v967_v38, %v3488_v34 }
 0x174   : > { %v703_v33 = vpop.permute.xlu1 %702  ;;  %v699_v45 = vpop.permute.xlu0 %698 }
 0x175   : > { %v975_v49 = vcombine.low %v966_v40, %v974_v41  ;;  %v976_v50 = vcombine.high %v966_v40, %v974_v41 }
 0x177   : > { %v983_v53 = vrot.slane %v975_v49, %v3535_v30  ;;  %v990_v54 = vrot.slane %v976_v50, %v3535_v30 }
 0x178   : > { %v711_v55 = vpop.permute.xlu1 %710  ;;  %v707_v60 = vpop.permute.xlu0 %706 }
 0x179   : > { %v755_v59 = vcombine.low %v703_v33, %v711_v55  ;;  %v991_v61 = vcombine.high %v983_v53, %v3298_v2  ;;  %v992_v43 = vcombine.high %v990_v54, %v3298_v2  ;;  %v995_v46 = vpack.i.b16 %v983_v53, %v949_v35 }
 0x17a   : > { %v998_v48 = vshrl.u32 %v983_v53, 16  ;;  %v1011_v62 = vpack.i.b16 %v990_v54, %v956_v36  ;;  %v1014_v63 = vshrl.u32 %v990_v54, 16  ;;  %v747_v1 = vcombine.low %v699_v45, %v707_v60 }
 0x17b   : > { %v762_v0 = vrot.slane %v755_v59, %v3488_v34  ;;  %v1003_v4 = vpack.i.b16 %v991_v61, %v957_v42  ;;  %v1006_v5 = vshrl.u32 %v991_v61, 16  ;;  %v1019_v6 = vpack.i.b16 %v992_v43, %v958_v44 }
 0x17c   : > { %v999_v3 = vpack.i.b16 %v998_v48, %v997_v52  ;;  %v1015_v7 = vpack.i.b16 %v1014_v63, %v1013_v57  ;;  %v1022_v9 = vshrl.u32 %v992_v43, 16  ;;  %v1025_v10 = vcombine.low %v995_v46, %v1011_v62 }
 0x17d   : > { %v754_v11 = vrot.slane %v747_v1, %v3488_v34  ;;  %v1007_v14 = vpack.i.b16 %v1006_v5, %v1005_v56  ;;  %v1033_v15 = vcombine.low %v1003_v4, %v1019_v6  ;;  %v809_v36 = vshrl.u32 %v746_v13, 16 }
 0x17e   : > { %v1023_v17 = vpack.i.b16 %v1022_v9, %v1021_v58  ;;  %v1059_v18 = vcombine.low %v999_v3, %v1015_v7  ;;  %v1032_v25 = vrot.slane %v1025_v10, %v3488_v34 }
 0x17f   : > { %v763_v19 = vcombine.low %v754_v11, %v762_v0  ;;  %v764_v20 = vcombine.high %v754_v11, %v762_v0  ;;  %v1040_v28 = vrot.slane %v1033_v15, %v3488_v34 }
 0x180   : > { %v1067_v35 = vcombine.low %v1007_v14, %v1023_v17  ;;  %v1066_v38 = vrot.slane %v1059_v18, %v3488_v34 }
 0x181   : > { %v771_v31 = vrot.slane %v763_v19, %v3535_v30  ;;  %v778_v32 = vrot.slane %v764_v20, %v3535_v30  ;;  %v1041_v37 = vcombine.low %v1032_v25, %v1040_v28  ;;  %v1042_v40 = vcombine.high %v1032_v25, %v1040_v28 }
 0x182   : > { %v1074_v52 = vrot.slane %v1067_v35, %v3488_v34 }
 0x183   : > { %v779_v41 = vcombine.high %v771_v31, %v3298_v2  ;;  %v780_v33 = vcombine.high %v778_v32, %v3298_v2  ;;  %v783_v42 = vpack.i.b16 %v771_v31, %v3543_v39  ;;  %v786_v44 = vshrl.u32 %v771_v31, 16 }
 0x184   : > { %v799_v45 = vpack.i.b16 %v778_v32, %v744_v51  ;;  %v802_v49 = vshrl.u32 %v778_v32, 16  ;;  %v1049_v50 = vrot.slane %v1041_v37, %v3535_v30  ;;  %v1075_v60 = vcombine.low %v1066_v38, %v1074_v52 }
 0x185   : > { %v787_v53 = vpack.i.b16 %v786_v44, %v785_v21  ;;  %v791_v54 = vpack.i.b16 %v779_v41, %v3555_v47  ;;  %v794_v55 = vshrl.u32 %v779_v41, 16  ;;  %v807_v56 = vpack.i.b16 %v780_v33, %v746_v13 }
 0x186   : > { %v803_v57 = vpack.i.b16 %v802_v49, %v801_v23  ;;  %v810_v58 = vshrl.u32 %v780_v33, 16  ;;  %v813_v59 = vcombine.low %v783_v42, %v799_v45  ;;  %v1057_v39 = vcombine.high %v1049_v50, %v3298_v2 }
 0x187   : > { %v795_v61 = vpack.i.b16 %v794_v55, %v793_v29  ;;  %v821_v43 = vcombine.low %v791_v54, %v807_v56  ;;  %v1083_v48 = vrot.slane %v1075_v60, %v3535_v30  ;;  %v1096_v62 = vshrl.u32 %v1049_v50, 16 }
 0x188   : > { %v811_v51 = vpack.i.b16 %v810_v58, %v809_v36  ;;  %v847_v46 = vcombine.low %v787_v53, %v803_v57  ;;  %v820_v63 = vrot.slane %v813_v59, %v3488_v34  ;;  %v1102_v0 = vshrl.u32 %v1057_v39, 16 }
 0x189   : > { %v828_v47 = vrot.slane %v821_v43, %v3488_v34  ;;  %v1076_v1 = vcombine.high %v1066_v38, %v1074_v52  ;;  %v1095_v4 = vpack.i.b16 %v1083_v48, %v1049_v50  ;;  %v1097_v5 = vshrl.u32 %v1083_v48, 16 }
 0x18a   : > { %v855_v3 = vcombine.low %v795_v61, %v811_v51  ;;  %v3582_v6 = vrot.slane %v1042_v40, %v3535_v30  ;;  %v1091_v10 = vcombine.high %v1083_v48, %v3298_v2  ;;  %v854_v13 = vrot.slane %v847_v46, %v3488_v34 }
 0x18b   : > { %v829_v7 = vcombine.low %v820_v63, %v828_v47  ;;  %v830_v9 = vcombine.high %v820_v63, %v828_v47  ;;  %v1090_v11 = vrot.slane %v1076_v1, %v3535_v30  ;;  %v1334_v15 = vsel %vm1329_vm2, %v1095_v4, 0 }
 0x18c   : > { %v862_v14 = vrot.slane %v855_v3, %v3488_v34  ;;  %v1098_v17 = vpack.i.b16 %v1097_v5, %v1096_v62  ;;  %2994 = vmatpush3.bf16.xpose.msra.mxu0 %v1334_v15  ;;  %v1101_v19 = vpack.i.b16 %v1091_v10, %v1057_v39  ;;  %v1103_v20 = vshrl.u32 %v1091_v10, 16 }
 0x18d   : > { %v837_v18 = vrot.slane %v829_v7, %v3535_v30  ;;  %v1107_v21 = vpack.i.b16 %v1090_v11, %v3582_v6  ;;  %3005 = vmatprep.subr.bf16.mxu0 %v3301_v8  ;;  %v1108_v28 = vshrl.u32 %v3582_v6, 16  ;;  %v1109_v29 = vshrl.u32 %v1090_v11, 16 }
 0x18e   : > { %v1380_v23 = vsel %vm1329_vm2, %v1098_v17, 0  ;;  %v863_v25 = vcombine.low %v854_v13, %v862_v14  ;;  %v1104_v31 = vpack.i.b16 %v1103_v20, %v1102_v0  ;;  %v864_v37 = vcombine.high %v854_v13, %v862_v14 }
 0x18f   : > { %3000 = vmatpush3.bf16.xpose.msra.mxu1 %v1380_v23  ;;  %v845_v32 = vcombine.high %v837_v18, %v3298_v2  ;;  %v1110_v36 = vpack.i.b16 %v1109_v29, %v1108_v28  ;;  %v1426_v38 = vsel %vm1329_vm2, %v1101_v19, 0  ;;  %v844_v40 = vrot.slane %v830_v9, %v3535_v30 }
 0x190   : > { %v871_v35 = vrot.slane %v863_v25, %v3535_v30  ;;  %3011 = vmatprep.subr.bf16.mxu1 %v3301_v8  ;;  %v1058_v41 = vcombine.high %v3582_v6, %v3298_v2  ;;  %v1092_v33 = vcombine.high %v1090_v11, %v3298_v2  ;;  %v884_v44 = vshrl.u32 %v837_v18, 16 }
 0x191   : > { %v890_v50 = vshrl.u32 %v845_v32, 16  ;;  %v878_v52 = vrot.slane %v864_v37, %v3535_v30  ;;  %v896_v60 = vshrl.u32 %v844_v40, 16  ;;  %v846_v43 = vcombine.high %v844_v40, %v3298_v2 }
 0x192   : > { %v883_v42 = vpack.i.b16 %v871_v35, %v837_v18  ;;  %v885_v45 = vshrl.u32 %v871_v35, 16  ;;  %v879_v49 = vcombine.high %v871_v35, %v3298_v2  ;;  %v1113_v53 = vpack.i.b16 %v1092_v33, %v1058_v41 }
 0x193   : > { %v1114_v54 = vshrl.u32 %v1058_v41, 16  ;;  %v1115_v58 = vshrl.u32 %v1092_v33, 16  ;;  %v895_v59 = vpack.i.b16 %v878_v52, %v844_v40  ;;  %v897_v61 = vshrl.u32 %v878_v52, 16 }
 0x194   : > { %2996 = vmatmul.mubr.msk.bf16.vlgmr.msra.gmra.mrb[12].mxu0 %vm1329_vm2, %v883_v42  ;;  %v886_v55 = vpack.i.b16 %v885_v45, %v884_v44  ;;  %v889_v56 = vpack.i.b16 %v879_v49, %v845_v32  ;;  %v891_v57 = vshrl.u32 %v879_v49, 16  ;;  %v1472_v39 = vsel %vm1329_vm2, %v1104_v31, 0 }
 0x195   : > { %3006 = vmatpush3.bf16.xpose.msra.mxu0 %v1426_v38  ;;  %3007 = vmatprep.mubr.msk.bf16.mxu0 %vm3302_vm1, %v3301_v8  ;;  %v1116_v46 = vpack.i.b16 %v1115_v58, %v1114_v54  ;;  %v880_v48 = vcombine.high %v878_v52, %v3298_v2  ;;  %v898_v62 = vpack.i.b16 %v897_v61, %v896_v60  ;;  %v902_v47 = vshrl.u32 %v846_v43, 16 }
 0x196   : > { %3002 = vmatmul.mubr.msk.bf16.vlgmr.msra.gmra.mrb[12].mxu1 %vm1329_vm2, %v886_v55  ;;  %3017 = vmatprep.subr.bf16.mxu0 %v3301_v8  ;;  %v892_v51 = vpack.i.b16 %v891_v57, %v890_v50  ;;  %v1518_v3 = vsel %vm1329_vm2, %v1107_v21, 0  ;;  %v1564_v4 = vsel %vm1329_vm2, %v1110_v36, 0  ;;  %v1610_v5 = vsel %vm1329_vm2, %v1113_v53, 0 }
 0x197   : > { %3012 = vmatpush3.bf16.xpose.msra.mxu1 %v1472_v39  ;;  %3013 = vmatprep.mubr.msk.bf16.mxu1 %vm3302_vm1, %v3301_v8  ;;  %v901_v63 = vpack.i.b16 %v880_v48, %v846_v43  ;;  %v903_v0 = vshrl.u32 %v880_v48, 16  ;;  %v1656_v6 = vsel %vm1329_vm2, %v1116_v46, 0  ;;  %v1120_v40 = vpack.c.bf16 %v3519_v16, %v3519_v16  ;;  %v1123_v43 = vpop.permute.xlu0 %1122  ;;  %v1127_v39 = vpop.permute.xlu1 %1126 }
 0x198   : > { %3023 = vmatprep.subr.bf16.mxu1 %v3301_v8  ;;  %v1119_v45 = vpack.c.bf16 %v3516_v12, %v3516_v12 }
 0x199   : > { %v904_v1 = vpack.i.b16 %v903_v0, %v902_v47 }
 0x19c   : > { %3008 = vmatmul.mubr.msk.bf16.vlgmr.msra.gmra.mrb[16].mxu0 %vm1329_vm2, %v889_v56 }
 0x19d   : > { %3018 = vmatpush3.bf16.xpose.msra.mxu0 %v1518_v3  ;;  %3019 = vmatprep.mubr.msk.bf16.mxu0 %vm3302_vm1, %v3301_v8  ;;  %v1161_v3 = vrot.slane %v1153_v26, %v3535_v30 }
 0x19e   : > { %3014 = vmatmul.mubr.msk.bf16.vlgmr.msra.gmra.mrb[16].mxu1 %vm1329_vm2, %v892_v51  ;;  %3029 = vmatprep.subr.bf16.mxu0 %v3301_v8 }
 0x19f   : > { %3024 = vmatpush3.bf16.xpose.msra.mxu1 %v1564_v4  ;;  %3025 = vmatprep.mubr.msk.bf16.mxu1 %vm3302_vm1, %v3301_v8 }
 0x1a0   : > { %3035 = vmatprep.subr.bf16.mxu1 %v3301_v8 }
 0x1a4   : > { %3020 = vmatmul.mubr.msk.bf16.vlgmr.msra.gmra.mrb[20].mxu0 %vm1329_vm2, %v895_v59 }
 0x1a5   : > { %3030 = vmatpush3.bf16.xpose.msra.mxu0 %v1610_v5  ;;  %3031 = vmatprep.mubr.msk.bf16.mxu0 %vm3302_vm1, %v3301_v8 }
 0x1a6   : > { %3026 = vmatmul.mubr.msk.bf16.vlgmr.msra.gmra.mrb[20].mxu1 %vm1329_vm2, %v898_v62  ;;  %3041 = vmatprep.subr.bf16.mxu0 %v3301_v8 }
 0x1a7   : > { %3036 = vmatpush3.bf16.xpose.msra.mxu1 %v1656_v6  ;;  %3037 = vmatprep.mubr.msk.bf16.mxu1 %vm3302_vm1, %v3301_v8  ;;  %v1168_v6 = vrot.slane %v1154_v27, %v3535_v30 }
 0x1a8   : > { %3047 = vmatprep.subr.bf16.mxu1 %v3301_v8 }
 0x1ac   : > { %3032 = vmatmul.mubr.msk.bf16.vlgmr.msra.gmra.mrb[24].mxu0 %vm1329_vm2, %v901_v63 }
 0x1ad   : > { %3043 = vmatprep.mubr.msk.bf16.mxu0 %vm3302_vm1, %v3301_v8 }
 0x1ae   : > { %3038 = vmatmul.mubr.msk.bf16.vlgmr.msra.gmra.mrb[24].mxu1 %vm1329_vm2, %v904_v1 }
 0x1af   : > { %3049 = vmatprep.mubr.msk.bf16.mxu1 %vm3302_vm1, %v3301_v8 }
 0x267   : > { %v1370_v7 = vpop.f32.mrb[12].mxu0 }
 0x268   : > { %v2997_v9 = vpop.f32.mrb[13].mxu0  ;;  %v1699_v10 = vsel %vm1698_vm3, %v1370_v7, -inf }
 0x269   : > { %v1416_v11 = vpop.f32.mrb[12].mxu1  ;;  %1700 = vmax.xlane.f32.xlu0 %v1699_v10  ;;  %v1373_v13 = vpop.f32.mrb[14].mxu0  ;;  %v1169_v10 = vcombine.high %v1161_v3, %v3298_v2 }
 0x26a   : > { %v2998_v14 = vpop.f32.mrb[15].mxu0  ;;  %v3003_v15 = vpop.f32.mrb[13].mxu1  ;;  %v1702_v17 = vsel %vm1698_vm3, %v1416_v11, -inf }
 0x26b   : > { %v1419_v18 = vpop.f32.mrb[14].mxu1  ;;  %1703 = vmax.xlane.f32.xlu1 %v1702_v17  ;;  %v1170_v14 = vcombine.high %v1168_v6, %v3298_v2  ;;  %v1209_v17 = vshrl.u32 %v1161_v3, 16 }
 0x26c   : > { %v3004_v19 = vpop.f32.mrb[15].mxu1  ;;  %v1217_v18 = vshrl.u32 %v1169_v10, 16 }
 0x26d   : > { %v1225_v19 = vshrl.u32 %v1168_v6, 16 }
 0x26f   : > { %v3643_v20 = vpop.f32.mrb[16].mxu0 }
 0x270   : > { %v3009_v21 = vpop.f32.mrb[17].mxu0  ;;  %v1705_v57 = vsel %vm1698_vm3, %v3643_v20, -inf }
 0x271   : > { %v1465_v23 = vpop.f32.mrb[18].mxu0  ;;  %v3645_v25 = vpop.f32.mrb[16].mxu1 }
 0x272   : > { %v3010_v28 = vpop.f32.mrb[19].mxu0  ;;  %v3015_v29 = vpop.f32.mrb[17].mxu1  ;;  %v1708_v58 = vsel %vm1698_vm3, %v3645_v25, -inf }
 0x273   : > { %v1511_v31 = vpop.f32.mrb[18].mxu1  ;;  %v1233_v28 = vshrl.u32 %v1170_v14, 16 }
 0x274   : > { %v3016_v32 = vpop.f32.mrb[19].mxu1 }
 0x277   : > { %v3647_v35 = vpop.f32.mrb[20].mxu0 }
 0x278   : > { %v3021_v36 = vpop.f32.mrb[21].mxu0  ;;  %v1711_v12 = vsel %vm1698_vm3, %v3647_v35, -inf }
 0x279   : > { %v1557_v37 = vpop.f32.mrb[22].mxu0  ;;  %v3649_v38 = vpop.f32.mrb[20].mxu1 }
 0x27a   : > { %v3022_v41 = vpop.f32.mrb[23].mxu0  ;;  %v3027_v33 = vpop.f32.mrb[21].mxu1  ;;  %v1714_v60 = vsel %vm1698_vm3, %v3649_v38, -inf }
 0x27b   : > { %v1603_v42 = vpop.f32.mrb[22].mxu1 }
 0x27c   : > { %v3028_v44 = vpop.f32.mrb[23].mxu1  ;;  %1134 = vrot.lane.b32.xlu1 %v1120_v40, %s3300_s13 }
 0x27f   : > { %1130 = vrot.lane.b32.xlu0 %v1119_v45, %s3300_s13  ;;  %v3657_v49 = vpop.f32.mrb[24].mxu0 }
 0x280   : > { %v3033_v50 = vpop.f32.mrb[25].mxu0  ;;  %v1717_v59 = vsel %vm1698_vm3, %v3657_v49, -inf }
 0x281   : > { %v1649_v52 = vpop.f32.mrb[26].mxu0  ;;  %v3659_v53 = vpop.f32.mrb[24].mxu1 }
 0x282   : > { %v3034_v54 = vpop.f32.mrb[27].mxu0  ;;  %v3039_v55 = vpop.f32.mrb[25].mxu1  ;;  %v1720_v61 = vsel %vm1698_vm3, %v3659_v53, -inf }
 0x283   : > { %v1695_v16 = vpop.f32.mrb[26].mxu1 }
 0x284   : > { %v3040_v56 = vpop.f32.mrb[27].mxu1 }
 0x29e   : > { %1706 = vmax.xlane.f32.xlu0 %v1705_v57 }
 0x2a0   : > { %1709 = vmax.xlane.f32.xlu1 %v1708_v58 }
 0x2a2   : > { %1712 = vmax.xlane.f32.xlu0 %v1711_v12 }
 0x2a4   : > { %1718 = vmax.xlane.f32.xlu1 %v1717_v59 }
 0x2a6   : > { %1715 = vmax.xlane.f32.xlu0 %v1714_v60 }
 0x2aa   : > { %1721 = vmax.xlane.f32.xlu0 %v1720_v61 }
 0x2f6   : > { %v1701_v51 = vpop.xlane.xlu0 %1700 }
 0x2f7   : > { %v1723_v46 = vsub.f32 %v1370_v7, %v1701_v51 }
 0x2f8   : > { %v1704_v48 = vpop.xlane.xlu1 %1703 }
 0x2f9   : > { %v1731_v62 = vmul.f32 1.442695, %v1723_v46  ;;  %v1724_v63 = vsub.f32 %v1416_v11, %v1704_v48 }
 0x2fa   : > { %v1131_v47 = vpop.permute.xlu0 %1130 }
 0x2fb   : > { %3202 = vpow2.f32 %v1731_v62  ;;  %v1733_v0 = vmul.f32 1.442695, %v1724_v63  ;;  %v1171_v1 = vcombine.low %v1123_v43, %v1131_v47 }
 0x2fc   : > { %v1135_v4 = vpop.permute.xlu1 %1134 }
 0x2fd   : > { %3204 = vpow2.f32 %v1733_v0  ;;  %v1179_v5 = vcombine.low %v1127_v39, %v1135_v4  ;;  %v1178_v7 = vrot.slane %v1171_v1, %v3488_v34 }
 0x2ff   : > { %v1186_v9 = vrot.slane %v1179_v5, %v3488_v34 }
 0x301   : > { %v1187_v11 = vcombine.low %v1178_v7, %v1186_v9  ;;  %v1188_v13 = vcombine.high %v1178_v7, %v1186_v9 }
 0x303   : > { %v1195_v26 = vrot.slane %v1187_v11, %v3535_v30  ;;  %v1202_v15 = vrot.slane %v1188_v13, %v3535_v30 }
 0x305   : > { %v3687_v21 = vpop.eup %3202  ;;  %v1203_v22 = vcombine.high %v1195_v26, %v3298_v2  ;;  %v1204_v24 = vcombine.high %v1202_v15, %v3298_v2  ;;  %v1207_v27 = vpack.i.b16 %v1195_v26, %v1161_v3  ;;  %v1210_v23 = vshrl.u32 %v1195_v26, 16 }
 0x306   : > { %v1223_v29 = vpack.i.b16 %v1202_v15, %v1168_v6  ;;  %v1226_v31 = vshrl.u32 %v1202_v15, 16  ;;  %v1747_v32 = vsel %vm1698_vm3, %v3687_v21, 0.0 }
 0x307   : > { %v3205_v36 = vpop.eup %3204  ;;  %v1211_v37 = vpack.i.b16 %v1210_v23, %v1209_v17  ;;  %v1215_v40 = vpack.i.b16 %v1203_v22, %v1169_v10  ;;  %v1218_v41 = vshrl.u32 %v1203_v22, 16  ;;  %v1231_v33 = vpack.i.b16 %v1204_v24, %v1170_v14  ;;  %1748 = vadd.xlane.f32.xlu1 %v1747_v32 }
 0x308   : > { %v1227_v42 = vpack.i.b16 %v1226_v31, %v1225_v19  ;;  %v1234_v44 = vshrl.u32 %v1204_v24, 16  ;;  %v1237_v45 = vcombine.low %v1207_v27, %v1223_v29  ;;  %v1750_v50 = vsel %vm1698_vm3, %v3205_v36, 0.0 }
 0x309   : > { %v1219_v52 = vpack.i.b16 %v1218_v41, %v1217_v18  ;;  %v1245_v54 = vcombine.low %v1215_v40, %v1231_v33  ;;  %1751 = vadd.xlane.f32.xlu0 %v1750_v50  ;;  %v1771_v24 = vpack.c.bf16 %v3687_v21, %v3687_v21  ;;  %v1772_v29 = vpack.c.bf16 %v3205_v36, %v3205_v36 }
 0x30a   : > { %v1235_v55 = vpack.i.b16 %v1234_v44, %v1233_v28  ;;  %v1271_v16 = vcombine.low %v1211_v37, %v1227_v42  ;;  %v1244_v56 = vrot.slane %v1237_v45, %v3488_v34 }
 0x30b   : > { %v1252_v57 = vrot.slane %v1245_v54, %v3488_v34 }
 0x30c   : > { %v1279_v58 = vcombine.low %v1219_v52, %v1235_v55  ;;  %v1278_v60 = vrot.slane %v1271_v16, %v3488_v34 }
 0x30d   : > { %v1253_v12 = vcombine.low %v1244_v56, %v1252_v57  ;;  %v1254_v59 = vcombine.high %v1244_v56, %v1252_v57 }
 0x30e   : > { %v1286_v61 = vrot.slane %v1279_v58, %v3488_v34 }
 0x30f   : > { %v1261_v43 = vrot.slane %v1253_v12, %v3535_v30  ;;  %v3700_v39 = vrot.slane %v1254_v59, %v3535_v30 }
 0x310   : > { %v1287_v51 = vcombine.low %v1278_v60, %v1286_v61  ;;  %v1288_v46 = vcombine.high %v1278_v60, %v1286_v61 }
 0x311   : > { %v1269_v48 = vcombine.high %v1261_v43, %v3298_v2  ;;  %v1308_v47 = vshrl.u32 %v1261_v43, 16  ;;  %v3709_v0 = vcombine.high %v3700_v39, %v3298_v2  ;;  %v1320_v7 = vshrl.u32 %v3700_v39, 16 }
 0x312   : > { %v1295_v62 = vrot.slane %v1287_v51, %v3535_v30  ;;  %v3705_v63 = vrot.slane %v1288_v46, %v3535_v30 }
 0x313   : > { %v1314_v6 = vshrl.u32 %v1269_v48, 16  ;;  %v1326_v18 = vshrl.u32 %v3709_v0, 16 }
 0x314   : > { %v1307_v1 = vpack.i.b16 %v1295_v62, %v1261_v43  ;;  %v1309_v3 = vshrl.u32 %v1295_v62, 16  ;;  %v1303_v4 = vcombine.high %v1295_v62, %v3298_v2  ;;  %v1319_v5 = vpack.i.b16 %v3705_v63, %v3700_v39 }
 0x315   : > { %v1321_v9 = vshrl.u32 %v3705_v63, 16  ;;  %v3718_v10 = vcombine.high %v3705_v63, %v3298_v2 }
 0x316   : > { %v1784_v11 = vsel %vm1782_vm4, %v1307_v1, 0  ;;  %v1310_v13 = vpack.i.b16 %v1309_v3, %v1308_v47  ;;  %v1313_v14 = vpack.i.b16 %v1303_v4, %v1269_v48  ;;  %v1315_v26 = vshrl.u32 %v1303_v4, 16 }
 0x317   : > { %3042 = vmatpush3.bf16.msra.mxu0 %v1784_v11  ;;  %v1322_v15 = vpack.i.b16 %v1321_v9, %v1320_v7  ;;  %v1325_v17 = vpack.i.b16 %v3718_v10, %v3709_v0  ;;  %v1327_v19 = vshrl.u32 %v3718_v10, 16  ;;  %v3172_v7 = vld [vmem:[%s3962_s5 + $0x48] sm:$0xff]   ;;  %v3176_v9 = vld [vmem:[%s3962_s5 + $0x80] sm:$0xff]  }
 0x318   : > { %v1830_v22 = vsel %vm1782_vm4, %v1310_v13, 0  ;;  %3053 = vmatprep.subr.bf16.mxu0 %v3301_v8  ;;  %v1316_v27 = vpack.i.b16 %v1315_v26, %v1314_v6  ;;  %v1876_v28 = vsel %vm1782_vm4, %v1313_v14, 0  ;;  %v3171_v6 = vld [vmem:[%s3962_s5] sm:$0xff]   ;;  %v3178_v10 = vld [vmem:[%s3962_s5 + $0xc8] sm:$0xff]   ;;  %v3175_v13 = vld [vmem:[%s3962_s5 + $0x50] sm:$0xff]  }
 0x319   : > { %3048 = vmatpush3.bf16.msra.mxu1 %v1830_v22  ;;  %v3729_v23 = vpack.i.b16 %v1327_v19, %v1326_v18  ;;  %v2060_v62 = vsel %vm1782_vm4, %v1325_v17, 0  ;;  %v3173_v11 = vld [vmem:[%s3962_s5 + $0x8] sm:$0xff]   ;;  %v3182_v26 = vld [vmem:[%s3962_s5 + $0xd0] sm:$0xff]   ;;  %v3179_v17 = vld [vmem:[%s3962_s5 + $0x58] sm:$0xff]  }
 0x31a   : > { %3044 = vmatmul.mubr.msk.bf16.vlgmr.msra.gmra.mrb[28].mxu0 %vm1698_vm3, %v1771_v24  ;;  %3059 = vmatprep.subr.bf16.mxu1 %v3301_v8  ;;  %v1922_v21 = vsel %vm1782_vm4, %v1316_v27, 0  ;;  %v3180_v14 = vld [vmem:[%s3962_s5 + $0x88] sm:$0xff]   ;;  %v3184_v18 = vld [vmem:[%s3962_s5 + $0x90] sm:$0xff]   ;;  %v3186_v19 = vld [vmem:[%s3962_s5 + $0xd8] sm:$0xff]  }
 0x31b   : > { %3054 = vmatpush3.bf16.msra.mxu0 %v1876_v28  ;;  %3055 = vmatprep.mubr.msk.bf16.mxu0 %vm3302_vm1, %v3301_v8  ;;  %v2106_v1 = vsel %vm1782_vm4, %v3729_v23, 0  ;;  %v3181_v22 = vld [vmem:[%s3962_s5 + $0x18] sm:$0xff]   ;;  %v3183_v24 = vld [vmem:[%s3962_s5 + $0x60] sm:$0xff]  }
 0x31c   : > { %3050 = vmatmul.mubr.msk.bf16.vlgmr.msra.gmra.mrb[28].mxu1 %vm1698_vm3, %v1772_v29  ;;  %3065 = vmatprep.subr.bf16.mxu0 %v3301_v8  ;;  %v3188_v27 = vld [vmem:[%s3962_s5 + $0x98] sm:$0xff]   ;;  %v3190_v23 = vld [vmem:[%s3962_s5 + $0xe0] sm:$0xff]   ;;  %v3187_v29 = vld [vmem:[%s3962_s5 + $0x68] sm:$0xff]  }
 0x31d   : > { %3060 = vmatpush3.bf16.msra.mxu1 %v1922_v21  ;;  %3061 = vmatprep.mubr.msk.bf16.mxu1 %vm3302_vm1, %v3301_v8  ;;  %v3185_v28 = vld [vmem:[%s3962_s5 + $0x20] sm:$0xff]  }
 0x31e   : > { %3071 = vmatprep.subr.bf16.mxu1 %v3301_v8  ;;  %v3192_v21 = vld [vmem:[%s3962_s5 + $0xa0] sm:$0xff]  }
 0x32b   : > { %v1707_v31 = vpop.xlane.xlu0 %1706 }
 0x32c   : > { %v1725_v32 = vsub.f32 %v3643_v20, %v1707_v31  ;;  %v3194_v31 = vld [vmem:[%s3962_s5 + $0xe8] sm:$0xff]  }
 0x32d   : > { %v1710_v36 = vpop.xlane.xlu1 %1709 }
 0x32e   : > { %v1735_v37 = vmul.f32 1.442695, %v1725_v32  ;;  %v1726_v40 = vsub.f32 %v3645_v25, %v1710_v36  ;;  %v3189_v32 = vld [vmem:[%s3962_s5 + $0x28] sm:$0xff]   ;;  %v3191_v36 = vld [vmem:[%s3962_s5 + $0x70] sm:$0xff]  }
 0x32f   : > { %v1713_v41 = vpop.xlane.xlu0 %1712 }
 0x330   : > { %3206 = vpow2.f32 %v1735_v37  ;;  %v1737_v33 = vmul.f32 1.442695, %v1726_v40  ;;  %v1727_v42 = vsub.f32 %v3647_v35, %v1713_v41  ;;  %v3193_v37 = vld [vmem:[%s3962_s5 + $0x30] sm:$0xff]  }
 0x331   : > { %v1719_v44 = vpop.xlane.xlu1 %1718 }
 0x332   : > { %3208 = vpow2.f32 %v1737_v33  ;;  %v1739_v45 = vmul.f32 1.442695, %v1727_v42  ;;  %v1729_v50 = vsub.f32 %v3657_v49, %v1719_v44  ;;  %v1968_v49 = vsel %vm1782_vm4, %v1319_v5, 0  ;;  %v3170_v5 = vld [vmem:[%s3962_s5 + $0x40] sm:$0xff]  }
 0x333   : > { %v1716_v52 = vpop.xlane.xlu0 %1715 }
 0x334   : > { %3210 = vpow2.f32 %v1739_v45  ;;  %v1743_v54 = vmul.f32 1.442695, %v1729_v50  ;;  %v1728_v55 = vsub.f32 %v3649_v38, %v1716_v52 }
 0x336   : > { %3212 = vpow2.f32 %v1743_v54  ;;  %v1741_v20 = vmul.f32 1.442695, %v1728_v55 }
 0x337   : > { %v1722_v16 = vpop.xlane.xlu0 %1721 }
 0x338   : > { %3214 = vpow2.f32 %v1741_v20  ;;  %v1730_v25 = vsub.f32 %v3659_v53, %v1722_v16  ;;  %v2014_v53 = vsel %vm1782_vm4, %v1322_v15, 0  ;;  %v3177_v15 = vld [vmem:[%s3962_s5 + $0x10] sm:$0xff]  }
 0x33a   : > { %v3207_v56 = vpop.eup %3206  ;;  %v1745_v57 = vmul.f32 1.442695, %v1730_v25 }
 0x33b   : > { %v1753_v35 = vsel %vm1698_vm3, %v3207_v56, 0.0  ;;  %v1773_v58 = vpack.c.bf16 %v3207_v56, %v3207_v56 }
 0x33c   : > { %v3209_v12 = vpop.eup %3208  ;;  %3216 = vpow2.f32 %v1745_v57  ;;  %1754 = vadd.xlane.f32.xlu1 %v1753_v35 }
 0x33d   : > { %3056 = vmatmul.mubr.msk.bf16.vlgmr.msra.gmra.mrb[32].mxu0 %vm1698_vm3, %v1773_v58  ;;  %v1756_v38 = vsel %vm1698_vm3, %v3209_v12, 0.0  ;;  %v1774_v59 = vpack.c.bf16 %v3209_v12, %v3209_v12 }
 0x33e   : > { %v3211_v60 = vpop.eup %3210  ;;  %3066 = vmatpush3.bf16.msra.mxu0 %v1968_v49  ;;  %1757 = vadd.xlane.f32.xlu0 %v1756_v38 }
 0x33f   : > { %3062 = vmatmul.mubr.msk.bf16.vlgmr.msra.gmra.mrb[32].mxu1 %vm1698_vm3, %v1774_v59  ;;  %v1759_v61 = vsel %vm1698_vm3, %v3211_v60, 0.0  ;;  %3067 = vmatprep.mubr.msk.bf16.mxu0 %vm3302_vm1, %v3301_v8  ;;  %v1775_v48 = vpack.c.bf16 %v3211_v60, %v3211_v60 }
 0x340   : > { %v3213_v43 = vpop.eup %3212  ;;  %3072 = vmatpush3.bf16.msra.mxu1 %v2014_v53  ;;  %1760 = vadd.xlane.f32.xlu1 %v1759_v61 }
 0x341   : > { %3077 = vmatprep.subr.bf16.mxu0 %v3301_v8  ;;  %3073 = vmatprep.mubr.msk.bf16.mxu1 %vm3302_vm1, %v3301_v8  ;;  %v1765_v46 = vsel %vm1698_vm3, %v3213_v43, 0.0  ;;  %v1777_v0 = vpack.c.bf16 %v3213_v43, %v3213_v43 }
 0x342   : > { %v3215_v39 = vpop.eup %3214  ;;  %3083 = vmatprep.subr.bf16.mxu1 %v3301_v8 }
 0x343   : > { %v1762_v51 = vsel %vm1698_vm3, %v3215_v39, 0.0  ;;  %v1776_v63 = vpack.c.bf16 %v3215_v39, %v3215_v39 }
 0x344   : > { %1763 = vadd.xlane.f32.xlu0 %v1762_v51  ;;  %1766 = vadd.xlane.f32.xlu1 %v1765_v46 }
 0x345   : > { %3068 = vmatmul.mubr.msk.bf16.vlgmr.msra.gmra.mrb[36].mxu0 %vm1698_vm3, %v1775_v48 }
 0x346   : > { %v3217_v47 = vpop.eup %3216  ;;  %3078 = vmatpush3.bf16.msra.mxu0 %v2060_v62  ;;  %3079 = vmatprep.mubr.msk.bf16.mxu0 %vm3302_vm1, %v3301_v8 }
 0x347   : > { %3074 = vmatmul.mubr.msk.bf16.vlgmr.msra.gmra.mrb[36].mxu1 %vm1698_vm3, %v1776_v63  ;;  %v1768_v3 = vsel %vm1698_vm3, %v3217_v47, 0.0  ;;  %v1778_v4 = vpack.c.bf16 %v3217_v47, %v3217_v47  ;;  %2949 = vmatprep.subr.bf16.mxu0 %v3170_v5 }
 0x348   : > { %3084 = vmatpush3.bf16.msra.mxu1 %v2106_v1  ;;  %1769 = vadd.xlane.f32.xlu0 %v1768_v3 }
 0x349   : > { %3085 = vmatprep.mubr.msk.bf16.mxu1 %vm3302_vm1, %v3301_v8  ;;  %v3174_v8 = vld [vmem:[%s3962_s5 + $0xc0] sm:$0xff]  }
 0x34a   : > { %2971 = vmatprep.subr.bf16.mxu1 %v3174_v8 }
 0x34d   : > { %3080 = vmatmul.mubr.msk.bf16.vlgmr.msra.gmra.mrb[40].mxu0 %vm1698_vm3, %v1777_v0 }
 0x34e   : > { %2950 = vmatpush3.bf16.msra.mxu0 %v3171_v6 }
 0x34f   : > { %3086 = vmatmul.mubr.msk.bf16.vlgmr.msra.gmra.mrb[40].mxu1 %vm1698_vm3, %v1778_v4  ;;  %2951 = vmatprep.subr.bf16.mxu0 %v3172_v7 }
 0x350   : > { %2972 = vmatpush3.bf16.msra.mxu1 %v3176_v9 }
 0x351   : > { %2973 = vmatprep.subr.bf16.mxu1 %v3178_v10 }
 0x352   : > { %2952 = vmatpush3.bf16.msra.mxu0 %v3173_v11 }
 0x353   : > { %2953 = vmatprep.subr.bf16.mxu0 %v3175_v13 }
 0x354   : > { %2974 = vmatpush3.bf16.msra.mxu1 %v3180_v14 }
 0x355   : > { %2975 = vmatprep.subr.bf16.mxu1 %v3182_v26 }
 0x356   : > { %2954 = vmatpush3.bf16.msra.mxu0 %v3177_v15 }
 0x357   : > { %2955 = vmatprep.subr.bf16.mxu0 %v3179_v17 }
 0x358   : > { %2976 = vmatpush3.bf16.msra.mxu1 %v3184_v18 }
 0x359   : > { %2977 = vmatprep.subr.bf16.mxu1 %v3186_v19 }
 0x35a   : > { %2956 = vmatpush3.bf16.msra.mxu0 %v3181_v22 }
 0x35b   : > { %2957 = vmatprep.subr.bf16.mxu0 %v3183_v24 }
 0x35c   : > { %2978 = vmatpush3.bf16.msra.mxu1 %v3188_v27 }
 0x35d   : > { %2979 = vmatprep.subr.bf16.mxu1 %v3190_v23 }
 0x35e   : > { %2958 = vmatpush3.bf16.msra.mxu0 %v3185_v28 }
 0x35f   : > { %2959 = vmatprep.subr.bf16.mxu0 %v3187_v29 }
 0x360   : > { %2980 = vmatpush3.bf16.msra.mxu1 %v3192_v21 }
 0x361   : > { %2981 = vmatprep.subr.bf16.mxu1 %v3194_v31 }
 0x362   : > { %2960 = vmatpush3.bf16.msra.mxu0 %v3189_v32 }
 0x363   : > { %2961 = vmatprep.subr.bf16.mxu0 %v3191_v36 }
 0x366   : > { %2962 = vmatpush3.bf16.msra.mxu0 %v3193_v37 }
 0x394   : > { %v1749_v54 = vpop.xlane.xlu1 %1748 }
 0x395   : > { %3218 = vrcp.f32 %v1749_v54 }
 0x396   : > { %v1752_v55 = vpop.xlane.xlu0 %1751 }
 0x39f   : > { %v3219_v43 = vpop.eup %3218 }
 0x3c9   : > { %v1755_v20 = vpop.xlane.xlu1 %1754 }
 0x3cb   : > { %v1758_v16 = vpop.xlane.xlu0 %1757 }
 0x3cd   : > { %v1761_v25 = vpop.xlane.xlu1 %1760 }
 0x3ce   : > { %3220 = vrcp.f32 %v1761_v25 }
 0x3cf   : > { %3222 = vrcp.f32 %v1752_v55 }
 0x3d1   : > { %v1764_v56 = vpop.xlane.xlu0 %1763  ;;  %v1767_v35 = vpop.xlane.xlu1 %1766 }
 0x3d2   : > { %3224 = vrcp.f32 %v1764_v56 }
 0x3d3   : > { %3226 = vrcp.f32 %v1755_v20 }
 0x3d4   : > { %3228 = vrcp.f32 %v1767_v35 }
 0x3d5   : > { %v1770_v53 = vpop.xlane.xlu0 %1769  ;;  %3230 = vrcp.f32 %v1758_v16 }
 0x3d6   : > { %3232 = vrcp.f32 %v1770_v53 }
 0x3d8   : > { %v3221_v39 = vpop.eup %3220 }
 0x3d9   : > { %v3223_v46 = vpop.eup %3222 }
 0x3dc   : > { %v3225_v47 = vpop.eup %3224 }
 0x3dd   : > { %v3227_v11 = vpop.eup %3226 }
 0x3de   : > { %v3229_v13 = vpop.eup %3228 }
 0x3df   : > { %v3231_v26 = vpop.eup %3230 }
 0x3e0   : > { %v3233_v19 = vpop.eup %3232 }
 0x3ed   : > { %v1820_v40 = vpop.f32.mrb[28].mxu0 }
 0x3ee   : > { %v3045_v41 = vpop.f32.mrb[29].mxu0  ;;  %v2156_v48 = vmul.f32 %v3219_v43, %v1820_v40 }
 0x3ef   : > { %v1823_v33 = vpop.f32.mrb[30].mxu0  ;;  %v1866_v42 = vpop.f32.mrb[28].mxu1 }
 0x3f0   : > { %v3046_v44 = vpop.f32.mrb[31].mxu0  ;;  %v3051_v45 = vpop.f32.mrb[29].mxu1  ;;  %v2157_v0 = vmul.f32 %v3223_v46, %v1866_v42 }
 0x3f1   : > { %v1869_v50 = vpop.f32.mrb[30].mxu1 }
 0x3f2   : > { %v3052_v52 = vpop.f32.mrb[31].mxu1 }
 0x410   : > { %v1912_v57 = vpop.f32.mrb[32].mxu0 }
 0x411   : > { %v3057_v58 = vpop.f32.mrb[33].mxu0  ;;  %v2158_v15 = vmul.f32 %v3227_v11, %v1912_v57 }
 0x412   : > { %v1915_v12 = vpop.f32.mrb[34].mxu0  ;;  %v1958_v49 = vpop.f32.mrb[32].mxu1 }
 0x413   : > { %v3058_v38 = vpop.f32.mrb[35].mxu0  ;;  %v3063_v59 = vpop.f32.mrb[33].mxu1  ;;  %v2159_v27 = vmul.f32 %v3231_v26, %v1958_v49 }
 0x414   : > { %v1961_v60 = vpop.f32.mrb[34].mxu1 }
 0x415   : > { %v3064_v61 = vpop.f32.mrb[35].mxu1 }
 0x418   : > { %v2004_v51 = vpop.f32.mrb[36].mxu0 }
 0x419   : > { %v2160_v62 = vmul.f32 %v3221_v39, %v2004_v51  ;;  %v3069_v63 = vpop.f32.mrb[37].mxu0 }
 0x41a   : > { %v2007_v1 = vpop.f32.mrb[38].mxu0  ;;  %v2050_v3 = vpop.f32.mrb[36].mxu1 }
 0x41b   : > { %v2876_v4 = vpack.c.bf16 %v2160_v62, %v2156_v48  ;;  %v2161_v5 = vmul.f32 %v3225_v47, %v2050_v3  ;;  %v3070_v6 = vpop.f32.mrb[39].mxu0  ;;  %v3075_v7 = vpop.f32.mrb[37].mxu1 }
 0x41c   : > { %v2053_v8 = vpop.f32.mrb[38].mxu1  ;;  %v3196_v6 = vld [vmem:[%s3962_s5 + $0xa8] sm:$0xff]   ;;  %v3197_v7 = vld [vmem:[%s3962_s5 + $0x38] sm:$0xff]  }
 0x41d   : > { %v2878_v9 = vpack.c.bf16 %v2161_v5, %v2157_v0  ;;  %v3076_v10 = vpop.f32.mrb[39].mxu1  ;;  %v2179_v32 = vrot.slane %v2876_v4, %v3488_v34  ;;  %v3195_v5 = vld [vmem:[%s3962_s5 + $0x78] sm:$0xff]   ;;  %2982 = vmatpush3.bf16.msra.mxu1 %v3196_v6 }
 0x41e   : > { %2963 = vmatprep.subr.bf16.mxu0 %v3195_v5 }
 0x41f   : > { %v2213_v41 = vrot.slane %v2878_v9, %v3488_v34  ;;  %2964 = vmatpush3.bf16.msra.mxu0 %v3197_v7 }
 0x420   : > { %v2096_v14 = vpop.f32.mrb[40].mxu0 }
 0x421   : > { %v2162_v17 = vmul.f32 %v3229_v13, %v2096_v14  ;;  %v3081_v18 = vpop.f32.mrb[41].mxu0  ;;  %v3198_v14 = vld [vmem:[%s3962_s5 + $0xf0] sm:$0xff]  }
 0x422   : > { %v2099_v22 = vpop.f32.mrb[42].mxu0  ;;  %v2142_v24 = vpop.f32.mrb[40].mxu1  ;;  %2983 = vmatprep.subr.bf16.mxu1 %v3198_v14 }
 0x423   : > { %v2877_v23 = vpack.c.bf16 %v2162_v17, %v2158_v15  ;;  %v2163_v28 = vmul.f32 %v3233_v19, %v2142_v24  ;;  %v3082_v29 = vpop.f32.mrb[43].mxu0  ;;  %v3087_v21 = vpop.f32.mrb[41].mxu1  ;;  %v3199_v17 = vld [vmem:[%s3962_s5 + $0xb0] sm:$0xff]  }
 0x424   : > { %v2145_v31 = vpop.f32.mrb[42].mxu1  ;;  %2984 = vmatpush3.bf16.msra.mxu1 %v3199_v17 }
 0x425   : > { %v2187_v36 = vrot.slane %v2877_v23, %v3488_v34  ;;  %v2879_v37 = vpack.c.bf16 %v2163_v28, %v2159_v27  ;;  %v3088_v40 = vpop.f32.mrb[43].mxu1  ;;  %v3201_v28 = vld [vmem:[%s3962_s5 + $0xb8] sm:$0xff]  }
 0x427   : > { %v2188_v33 = vcombine.low %v2179_v32, %v2187_v36  ;;  %v2189_v42 = vcombine.high %v2179_v32, %v2187_v36  ;;  %v2221_v44 = vrot.slane %v2879_v37, %v3488_v34 }
 0x429   : > { %v2196_v45 = vrot.slane %v2188_v33, %v3535_v30  ;;  %v2203_v50 = vrot.slane %v2189_v42, %v3535_v30  ;;  %v2222_v52 = vcombine.low %v2213_v41, %v2221_v44  ;;  %v2223_v54 = vcombine.high %v2213_v41, %v2221_v44 }
 0x42b   : > { %v2204_v55 = vcombine.high %v2196_v45, %v3298_v2  ;;  %v2230_v20 = vrot.slane %v2222_v52, %v3535_v30  ;;  %v2237_v16 = vrot.slane %v2223_v54, %v3535_v30  ;;  %v2205_v25 = vcombine.high %v2203_v50, %v3298_v2 }
 0x42c   : > { %v2244_v56 = vshrl.u32 %v2196_v45, 16  ;;  %v2260_v38 = vshrl.u32 %v2203_v50, 16 }
 0x42d   : > { %v2238_v57 = vcombine.high %v2230_v20, %v3298_v2  ;;  %v2239_v35 = vcombine.high %v2237_v16, %v3298_v2  ;;  %v2242_v58 = vpack.i.b16 %v2230_v20, %v2196_v45  ;;  %v2245_v12 = vshrl.u32 %v2230_v20, 16 }
 0x42e   : > { %v2252_v49 = vshrl.u32 %v2204_v55, 16  ;;  %v2258_v59 = vpack.i.b16 %v2237_v16, %v2203_v50  ;;  %v2261_v60 = vshrl.u32 %v2237_v16, 16  ;;  %v2268_v51 = vshrl.u32 %v2205_v25, 16 }
 0x42f   : > { %v2246_v53 = vpack.i.b16 %v2245_v12, %v2244_v56  ;;  %v2250_v61 = vpack.i.b16 %v2238_v57, %v2204_v55  ;;  %v2253_v43 = vshrl.u32 %v2238_v57, 16  ;;  %v2266_v39 = vpack.i.b16 %v2239_v35, %v2205_v25 }
 0x430   : > { %v2262_v46 = vpack.i.b16 %v2261_v60, %v2260_v38  ;;  %v2269_v48 = vshrl.u32 %v2239_v35, 16  ;;  %v2272_v62 = vcombine.low %v2242_v58, %v2258_v59 }
 0x431   : > { %v2254_v63 = vpack.i.b16 %v2253_v43, %v2252_v49  ;;  %v2280_v47 = vcombine.low %v2250_v61, %v2266_v39  ;;  %v2880_v61 = vld [vmem:[%s3963_s6] ss:$0 sm:$0xff] }
 0x432   : > { %v2270_v1 = vpack.i.b16 %v2269_v48, %v2268_v51  ;;  %v2306_v3 = vcombine.low %v2246_v53, %v2262_v46  ;;  %v2279_v0 = vrot.slane %v2272_v62, %v3488_v34 }
 0x433   : > { %v2287_v4 = vrot.slane %v2280_v47, %v3488_v34 }
 0x434   : > { %v2314_v8 = vcombine.low %v2254_v63, %v2270_v1  ;;  %v2313_v11 = vrot.slane %v2306_v3, %v3488_v34 }
 0x435   : > { %v2288_v9 = vcombine.low %v2279_v0, %v2287_v4  ;;  %v2289_v10 = vcombine.high %v2279_v0, %v2287_v4 }
 0x436   : > { %v2321_v13 = vrot.slane %v2314_v8, %v3488_v34  ;;  %v3200_v34 = vld [vmem:[%s3962_s5 + $0xf8] sm:$0xff]  }
 0x437   : > { %v2296_v26 = vrot.slane %v2288_v9, %v3535_v30  ;;  %v2303_v15 = vrot.slane %v2289_v10, %v3535_v30  ;;  %2985 = vmatprep.subr.bf16.mxu1 %v3200_v34 }
 0x438   : > { %v2322_v18 = vcombine.low %v2313_v11, %v2321_v13  ;;  %v2323_v19 = vcombine.high %v2313_v11, %v2321_v13  ;;  %2986 = vmatpush3.bf16.msra.mxu1 %v3201_v28 }
 0x439   : > { %v2304_v22 = vcombine.high %v2296_v26, %v3298_v2  ;;  %v2305_v24 = vcombine.high %v2303_v15, %v3298_v2  ;;  %v2343_v29 = vshrl.u32 %v2296_v26, 16  ;;  %v2355_v21 = vshrl.u32 %v2303_v15, 16 }
 0x43a   : > { %v2330_v27 = vrot.slane %v2322_v18, %v3535_v30  ;;  %v2337_v23 = vrot.slane %v2323_v19, %v3535_v30 }
 0x43b   : > { %v2349_v40 = vshrl.u32 %v2304_v22, 16  ;;  %v2361_v41 = vshrl.u32 %v2305_v24, 16 }
 0x43c   : > { %v2344_v31 = vshrl.u32 %v2330_v27, 16  ;;  %v2338_v32 = vcombine.high %v2330_v27, %v3298_v2  ;;  %v2339_v36 = vcombine.high %v2337_v23, %v3298_v2  ;;  %v2356_v37 = vshrl.u32 %v2337_v23, 16 }
 0x43d   : > { %v2342_v33 = vpack.i.b16 %v2330_v27, %v2296_v26  ;;  %v2354_v42 = vpack.i.b16 %v2337_v23, %v2303_v15 }
 0x43e   : > { %v2345_v44 = vpack.i.b16 %v2344_v31, %v2343_v29  ;;  %v2350_v30 = vshrl.u32 %v2338_v32, 16  ;;  %v2362_v45 = vshrl.u32 %v2339_v36, 16  ;;  %v2357_v50 = vpack.i.b16 %v2356_v37, %v2355_v21 }
 0x43f   : > { %v2348_v52 = vpack.i.b16 %v2338_v32, %v2304_v22  ;;  %v2360_v54 = vpack.i.b16 %v2339_v36, %v2305_v24 }
 0x440   : > { %2364 = vrot.lane.b32.xlu0 %v2345_v44, %s3300_s13  ;;  %v2351_v55 = vpack.i.b16 %v2350_v30, %v2349_v40  ;;  %v2363_v20 = vpack.i.b16 %v2362_v45, %v2361_v41 }
 0x442   : > { %2366 = vrot.lane.b32.xlu1 %v2351_v55, %s3300_s13 }
 0x446   : > { %2370 = vrot.lane.b32.xlu1 %v2363_v20, %s3300_s13 }
 0x44a   : > { %2368 = vrot.lane.b32.xlu1 %v2357_v50, %s3300_s13  ;;  %s2821_s13 = sshll.u32 %s280_s9, 3 }
 0x44b   : > { %s282_s18 = scalar_lea.vmem [#allocation2], %s2821_s13 }
 0x44c   : > { %s2746_s19 = sshll.u32 %s282_s18, 4  ;;  %s3916_s19 = int_to_ptr.vmem [resolvable:$true] %s2746_s19 }
 0x44d   : > { %s3234_s23 = scalar_lea.vmem %s3916_s19, 128  ;;  %p3241_p0 = scmp.lt.s32.totalorder %s3916_s19, %s3239_s21 }
 0x44e   : > { %p3235_p11 = scmp.ne.s32.totalorder %s3916_s19, %s3234_s23  ;;  %p3242_p1 = scmp.lt.s32.totalorder %s3240_s8, %s3234_s23 }
 0x450   : > { %p3236_p12 = pnand %p3235_p11, %p3383_p5  ;;  %p3243_p2 = por %p3242_p1, %p3241_p0 }
 0x452   : > { %p3237_p13 = pneg %p3236_p12 }
 0x454   : > { %p3244_p3 = pnand %p3243_p2, %p3237_p13 }
 0x4b2   : > { %v2365_v2 = vpop.permute.xlu0 %2364 }
 0x4b3   : > { %v2374_v56 = vsel %vm1329_vm2, %v2342_v33, %v2365_v2 }
 0x4b4   : > { %v2367_v16 = vpop.permute.xlu1 %2366 }
 0x4b5   : > { %v2378_v25 = vsel %vm1329_vm2, %v2348_v52, %v2367_v16 }
 0x4b6   : > { %2683 = vmatprep.mubr.bf16.mxu0 %v2378_v25 }
 0x4b7   : > { %2684 = vmatmul.mubr.bf16.vlgmr.msra.gmra.mrb[44].mxu0 %v2374_v56 }
 0x4b8   : > { %v2371_v57 = vpop.permute.xlu1 %2370 }
 0x4b9   : > { %v2386_v35 = vsel %vm1329_vm2, %v2360_v54, %v2371_v57 }
 0x4ba   : > { %2723 = vmatprep.mubr.bf16.mxu1 %v2386_v35 }
 0x4bc   : > { %v2369_v58 = vpop.permute.xlu1 %2368 }
 0x4bd   : > { %v2382_v12 = vsel %vm1329_vm2, %v2354_v42, %v2369_v58 }
 0x4be   : > { %2724 = vmatmul.mubr.bf16.vlgmr.msra.gmra.mrb[44].mxu1 %v2382_v12 }
 0x58a   : > { %v2965_v49 = vpop.f32.mrb[44].mxu0 }
 0x58b   : > { %v2966_v38 = vpop.f32.mrb[45].mxu0 }
 0x58c   : > { %v2967_v59 = vadd.f32 %v2966_v38, %v2965_v49  ;;  %v2968_v60 = vpop.f32.mrb[46].mxu0 }
 0x58d   : > { %v2969_v53 = vpop.f32.mrb[47].mxu0 }
 0x58e   : > { %v2686_v51 = vadd.f32 %v2967_v59, %v2880_v61 }
 0x591   : > { %v2987_v43 = vpop.f32.mrb[44].mxu1 }
 0x592   : > { %v2988_v39 = vpop.f32.mrb[45].mxu1 }
 0x593   : > { %v2989_v46 = vadd.f32 %v2988_v39, %v2987_v43  ;;  %v2990_v48 = vpop.f32.mrb[46].mxu1 }
 0x594   : > { %v2991_v62 = vpop.f32.mrb[47].mxu1 }
 0x595   : > { %v2726_v63 = vadd.f32 %v2989_v46, %v2686_v51 }
 0x597   : > { %2731 = vst.msk [vmem:[%s282_s18] sm:$0xff] %vm344_vm0, %v2726_v63 }
 0x598   : > { %3247 = shalt.err (!%p3244_p3)
}
 0x599   : > { %s3248_s9 = scalar_lea.hbm %s3914_s22, 128  ;;  %s3252_s16 = scalar_lea.hbm %s3964_s7, 256 }
 0x59a   : > { %p3249_p4 = scmp.ne.s32.totalorder %s3914_s22, %s3248_s9  ;;  %p3253_p9 = scmp.lt.u32.totalorder %s3914_s22, %s3964_s7 }
 0x59b   : > { %p3254_p10 = scmp.lt.u32.totalorder %s3252_s16, %s3248_s9  ;;  %p3256_p12 = scmp.lt.u32.totalorder %s3248_s9, %s3914_s22 }
 0x59c   : > { %p3250_p7 = pnand %p3249_p4, %p3383_p5 }
 0x59d   : > { %p3255_p11 = por %p3254_p10, %p3253_p9 }
 0x59e   : > { %p3251_p8 = pneg %p3250_p7 }
 0x59f   : > { %p3257_p13 = por %p3256_p12, %p3255_p11 }
 0x5a1   : > { %p3258_p0 = pnand %p3257_p13, %p3251_p8 }
 0x5a3   : > { %3261 = shalt.err (!%p3258_p0)
}
 0x5a4   : > { %3089 = dma.vmem_to_hbm [thread:$0]  (%p3383_p5), %s3916_s19, 128, %s3914_s22, %s2733_s28  }
 0x5a5 PF: > { %p3095_p1 = scmp.ge.s32.totalorder %s3296_s27, 2  ;;  %s2758_s14 = sand.u32 1, %s3284_s24  }
 0x5a6   : > { %s2759_s20 = scalar_lea.sflag [#allocation3], %s2758_s14 }
 0x5a7   : > { %p3092_p2 = pnand %p3095_p1, %p3387_p6 }
 0x5a9   : > { %3279 = dma.done.wait (!%p3092_p2), %s2759_s20, 128  }
 0x5aa   : > { %3281 = vsyncadd (!%p3092_p2), %s2759_s20, 4294967168  ;;  %p17_p3 = scmp.ge.s32.totalorder %s3370_s30, 4   ;;  %s3967_s24 = smov %s3288_s25 }
 0x5ab   : > { %s3968_s25 = smov %s3292_s26  ;;  %s3969_s26 = smov %s3381_s10 }
 0x5ac   : > { %s3970_s27 = smov %s3370_s30  ;;  %19 = sbr.rel (!%p17_p3) target bundleno = 3 (0x3), region = 86 }
 0x5b3   :  { %2764 = vsyncpa [#allocation3], 1 }
 0x5b4   :  { %2766 = vsyncpa [#allocation3 + $0x1], 1 }

</bundles_post_ra>
